<compile_context>
chip_gen: v7x
topology: tpu7x:2x2x1
jax: 0.10.0
libtpu: 0.0.40
codegen_flags: <defaults>
</compile_context>

<pallas_src>
import jax
import jax.numpy as jnp
from jax.experimental import pallas as pl
from jax.experimental.pallas import tpu as pltpu


def _layer_norm(x, g, b, eps=1e-5):
    mu = jnp.mean(x, axis=-1, keepdims=True)
    var = jnp.mean((x - mu) ** 2, axis=-1, keepdims=True)
    return (x - mu) * jax.lax.rsqrt(var + eps) * g + b


def _make_encoder_call(B, L, D, H, DK, DH, K1, P1, K2, P2, NL):
    """One pallas_call implementing the whole layer stack (fused layers)."""
    assert 2 * P1 == K1 - 1 and 2 * P2 == K2 - 1, "only same-length convs supported"
    HD = H * DK
    inv_scale = 1.0 / (float(DK) ** 0.5)

    def kernel(x_ref, kb_ref, np_ref,
               wqkv_ref, bqkv_ref, wo_ref, bo_ref, g1_ref, b1_ref,
               c1w_ref, c1b_ref, c2w_ref, c2b_ref, g2_ref, b2_ref,
               o_ref):
        layer = pl.program_id(1)

        # Residual stream lives in the output VMEM block across the layer axis.
        @pl.when(layer == 0)
        def _init():
            o_ref[0] = x_ref[0]

        x = o_ref[0]               # (L, D)  f32 residual stream
        key_bias = kb_ref[0]       # (1, L)  0 where valid key, -1e9 where PAD key
        nonpad = np_ref[0]         # (L, 1)

        # ---- multi-head self attention ----
        # fused QKV projection: one MXU pass, bf16 inputs, f32 accumulation.
        x_bf = x.astype(jnp.bfloat16)
        qkv = jnp.dot(x_bf, wqkv_ref[0],
                      preferred_element_type=jnp.float32) + bqkv_ref[0]   # (L, 3*HD)

        wo_all = wo_ref[0]                                    # (H, DK, D) bf16
        attn_out = jnp.zeros((L, D), jnp.float32) + bo_ref[0]  # seed with out-proj bias
        for h in range(H):                                    # small static unroll
            qh = qkv[:, h * DK:(h + 1) * DK].astype(jnp.bfloat16)
            kh = qkv[:, HD + h * DK:HD + (h + 1) * DK].astype(jnp.bfloat16)
            vh = qkv[:, 2 * HD + h * DK:2 * HD + (h + 1) * DK].astype(jnp.bfloat16)
            s = jnp.einsum('ld,md->lm', qh, kh,
                           preferred_element_type=jnp.float32) * inv_scale
            s = s + key_bias                          # broadcast (1, L) over queries
            s = s - jnp.max(s, axis=-1, keepdims=True)
            p = jnp.exp(s)
            p = p * pl.reciprocal(jnp.sum(p, axis=-1, keepdims=True), approx=True)
            ctx = jnp.dot(p.astype(jnp.bfloat16), vh,
                          preferred_element_type=jnp.float32)             # (L, DK)
            # accumulate the output projection per head (no concatenate)
            attn_out = attn_out + jnp.dot(ctx.astype(jnp.bfloat16), wo_all[h],
                                          preferred_element_type=jnp.float32)

        y = _layer_norm(attn_out + x, g1_ref[0], b1_ref[0]) * nonpad       # (L, D)

        # ---- position-wise conv feed-forward (conv == one im2col matmul) ----
        def im2col(v, K, P):
            if K == 1:
                return v
            zp = jnp.zeros((P, v.shape[1]), jnp.float32)
            vp = jnp.concatenate([zp, v, zp], axis=0)           # (L + K - 1, C)
            return jnp.concatenate([vp[kk:kk + L, :] for kk in range(K)], axis=1)

        win1 = im2col(y, K1, P1).astype(jnp.bfloat16)           # (L, K1*D)
        hidden = jnp.dot(win1, c1w_ref[0],
                         preferred_element_type=jnp.float32) + c1b_ref[0]
        hidden = jnp.maximum(hidden, 0.0)                       # (L, DH)

        win2 = im2col(hidden, K2, P2).astype(jnp.bfloat16)      # (L, K2*DH)
        ff = jnp.dot(win2, c2w_ref[0],
                     preferred_element_type=jnp.float32) + c2b_ref[0]

        z = _layer_norm(ff + y, g2_ref[0], b2_ref[0]) * nonpad
        o_ref[0] = z

    # ---- BlockSpecs -------------------------------------------------------
    def per_batch(shape):                 # activation-like: blocked over batch
        n = len(shape)
        return pl.BlockSpec((1,) + shape, lambda b, l, _n=n: (b,) + (0,) * _n)

    def per_layer(shape):                 # weight-like: streamed over layers
        n = len(shape)
        return pl.BlockSpec((1,) + shape, lambda b, l, _n=n: (l,) + (0,) * _n)

    in_specs = [
        per_batch((L, D)),            # x (embeddings)
        per_batch((1, L)),            # key-padding additive bias row
        per_batch((L, 1)),            # non-pad mask
        per_layer((D, 3 * HD)),       # fused QKV weight (bf16)
        per_layer((1, 3 * HD)),       # fused QKV bias
        per_layer((H, DK, D)),        # output projection, per head (bf16)
        per_layer((1, D)),            # output projection bias
        per_layer((1, D)),            # ln1 gamma
        per_layer((1, D)),            # ln1 beta
        per_layer((K1 * D, DH)),      # conv1 weight, im2col layout (bf16)
        per_layer((1, DH)),           # conv1 bias
        per_layer((K2 * DH, D)),      # conv2 weight, im2col layout (bf16)
        per_layer((1, D)),            # conv2 bias
        per_layer((1, D)),            # ln2 gamma
        per_layer((1, D)),            # ln2 beta
    ]

    # Rough per-step VMEM budget (double-buffered blocks + working set),
    # kept under the v7x 64 MiB physical capacity.
    blk = (2 * L * D * 4 + 2 * L * 4
           + (D * 3 * HD + HD * D + K1 * D * DH + K2 * DH * D) * 2
           + (3 * HD + 6 * D + DH) * 4)
    work = (L * 3 * HD + L * L + L * DH + 4 * L * D) * 4 + L * (K1 * D + K2 * DH) * 2
    vmem_limit = int(min(max(2 * blk + work, 32 * 1024 * 1024), 56 * 1024 * 1024))

    return pl.pallas_call(
        kernel,
        grid=(B, NL),
        in_specs=in_specs,
        out_specs=pl.BlockSpec((1, L, D), lambda b, l: (b, 0, 0)),
        out_shape=jax.ShapeDtypeStruct((B, L, D), jnp.float32),
        compiler_params=pltpu.CompilerParams(
            dimension_semantics=("parallel", "arbitrary"),
            vmem_limit_bytes=vmem_limit,
        ),
    )


class EncoderPallas:
    """JAX/Pallas port of the FastSpeech2 Encoder (forward-pass semantics)."""

    def __init__(self, max_seq_len, encoder_n_layer, vocab_size, encoder_dim, PAD,
                 encoder_conv1d_filter_size, fft_conv1d_kernel, fft_conv1d_padding,
                 encoder_head, dropout, key):
        del dropout  # identity at inference
        self.pad = PAD
        self.nl = encoder_n_layer
        self.d = encoder_dim
        self.h = encoder_head
        self.dk = encoder_dim // encoder_head
        self.dh = encoder_conv1d_filter_size
        self.k1, self.k2 = fft_conv1d_kernel
        self.p1, self.p2 = fft_conv1d_padding
        hd = self.h * self.dk
        n_position = max_seq_len + 1

        keys = iter(jax.random.split(key, 2 + 16 * encoder_n_layer))

        def nrm(shape, s=0.05):
            return jax.random.normal(next(keys), shape, jnp.float32) * s

        # embeddings (padding_idx rows zeroed, as nn.Embedding does)
        self.word_emb = nrm((vocab_size, encoder_dim), 0.1).at[PAD].set(0.0)
        self.pos_emb = nrm((n_position, encoder_dim), 0.1).at[PAD].set(0.0)

        wqkv, bqkv, wo, bo, g1, be1 = [], [], [], [], [], []
        c1w, c1b, c2w, c2b, g2, be2 = [], [], [], [], [], []
        for _ in range(encoder_n_layer):
            wq, wk, wv = nrm((encoder_dim, hd)), nrm((encoder_dim, hd)), nrm((encoder_dim, hd))
            bq, bk, bv = nrm((1, hd)), nrm((1, hd)), nrm((1, hd))
            wqkv.append(jnp.concatenate([wq, wk, wv], axis=1))            # (D, 3*HD)
            bqkv.append(jnp.concatenate([bq, bk, bv], axis=1))            # (1, 3*HD)
            wo.append(nrm((hd, encoder_dim)).reshape(self.h, self.dk, encoder_dim))
            bo.append(nrm((1, encoder_dim)))
            g1.append(jnp.ones((1, encoder_dim), jnp.float32))
            be1.append(jnp.zeros((1, encoder_dim), jnp.float32))
            c1w.append(nrm((self.k1, encoder_dim, self.dh))
                       .reshape(self.k1 * encoder_dim, self.dh))          # im2col layout
            c1b.append(nrm((1, self.dh)))
            c2w.append(nrm((self.k2, self.dh, encoder_dim))
                       .reshape(self.k2 * self.dh, encoder_dim))          # im2col layout
            c2b.append(nrm((1, encoder_dim)))
            g2.append(jnp.ones((1, encoder_dim), jnp.float32))
            be2.append(jnp.zeros((1, encoder_dim), jnp.float32))

        stack = lambda xs: jnp.stack(xs, axis=0)
        # MXU-facing weights stored in bf16 (f32 accumulation in-kernel).
        self.wqkv = stack(wqkv).astype(jnp.bfloat16)
        self.bqkv = stack(bqkv)
        self.wo = stack(wo).astype(jnp.bfloat16)
        self.bo = stack(bo)
        self.g1, self.be1 = stack(g1), stack(be1)
        self.c1w = stack(c1w).astype(jnp.bfloat16)
        self.c1b = stack(c1b)
        self.c2w = stack(c2w).astype(jnp.bfloat16)
        self.c2b = stack(c2b)
        self.g2, self.be2 = stack(g2), stack(be2)

    def __call__(self, src_seq, src_pos):
        B, L = src_seq.shape
        # get_non_pad_mask
        nonpad = (src_seq != self.pad).astype(jnp.float32)[:, :, None]           # (B, L, 1)
        # get_attn_key_pad_mask in additive-bias row form (no (B, L, L) tile)
        key_bias = jnp.where(src_seq == self.pad,
                             jnp.float32(-1e9), jnp.float32(0.0))[:, None, :]    # (B, 1, L)
        # TODO(synk): embedding gathers stay in plain JAX glue (a Pallas gather via
        # scalar prefetch adds complexity with no benefit for this access pattern).
        x = (self.word_emb[src_seq] + self.pos_emb[src_pos]).astype(jnp.float32)  # (B, L, D)

        call = _make_encoder_call(B, L, self.d, self.h, self.dk, self.dh,
                                  self.k1, self.p1, self.k2, self.p2, self.nl)
        out = call(x, key_bias, nonpad,
                   self.wqkv, self.bqkv, self.wo, self.bo, self.g1, self.be1,
                   self.c1w, self.c1b, self.c2w, self.c2b, self.g2, self.be2)
        return out, nonpad


if __name__ == "__main__":
    key = jax.random.PRNGKey(0)
    pkey, dkey = jax.random.split(key)

    B, L = 2, 16
    PAD = 0
    enc = EncoderPallas(
        max_seq_len=32, encoder_n_layer=2, vocab_size=40, encoder_dim=32, PAD=PAD,
        encoder_conv1d_filter_size=64, fft_conv1d_kernel=(9, 1),
        fft_conv1d_padding=(4, 0), encoder_head=2, dropout=0.1, key=pkey)

    # deterministic token ids (>=1) with trailing padding on the second sequence
    tokens = jax.random.randint(dkey, (B, L), 1, 40, dtype=jnp.int32)
    lengths = jnp.array([L, L - 4], dtype=jnp.int32)
    pos_idx = jnp.arange(1, L + 1, dtype=jnp.int32)[None, :]
    valid = pos_idx <= lengths[:, None]
    src_seq = jnp.where(valid, tokens, PAD)
    src_pos = jnp.where(valid, pos_idx, PAD)

    enc_output, non_pad_mask = enc(src_seq, src_pos)
    jax.block_until_ready((enc_output, non_pad_mask))

    assert enc_output.shape == (B, L, 32)
    assert non_pad_mask.shape == (B, L, 1)
    assert bool(jnp.all(jnp.isfinite(enc_output)))
    print("KERNEL_OK")
</pallas_src>

<mosaic_0001>
module attributes {stable_mosaic.version = 11 : i64} {
  func.func @kernel(%arg0: i32, %arg1: i32, %arg2: memref<1x16x32xf32, #tpu.memory_space<vmem>>, %arg3: memref<1x1x16xf32, #tpu.memory_space<vmem>>, %arg4: memref<1x16x1xf32, #tpu.memory_space<vmem>>, %arg5: memref<1x32x96xbf16, #tpu.memory_space<vmem>>, %arg6: memref<1x1x96xf32, #tpu.memory_space<vmem>>, %arg7: memref<1x2x16x32xbf16, #tpu.memory_space<vmem>>, %arg8: memref<1x1x32xf32, #tpu.memory_space<vmem>>, %arg9: memref<1x1x32xf32, #tpu.memory_space<vmem>>, %arg10: memref<1x1x32xf32, #tpu.memory_space<vmem>>, %arg11: memref<1x288x64xbf16, #tpu.memory_space<vmem>>, %arg12: memref<1x1x64xf32, #tpu.memory_space<vmem>>, %arg13: memref<1x64x32xbf16, #tpu.memory_space<vmem>>, %arg14: memref<1x1x32xf32, #tpu.memory_space<vmem>>, %arg15: memref<1x1x32xf32, #tpu.memory_space<vmem>>, %arg16: memref<1x1x32xf32, #tpu.memory_space<vmem>>, %arg17: memref<1x16x32xf32, #tpu.memory_space<vmem>>) attributes {dimension_semantics = [#tpu.dimension_semantics<parallel>, #tpu.dimension_semantics<arbitrary>], iteration_bounds = array<i64: 2, 2>, scalar_prefetch = 0 : i64, scratch_operands = 0 : i64, tpu.core_type = #tpu.core_type<tc>, window_params = [{transform_indices = @transform_0, window_bounds = array<i64: 1, 16, 32>}, {transform_indices = @transform_1, window_bounds = array<i64: 1, 1, 16>}, {transform_indices = @transform_2, window_bounds = array<i64: 1, 16, 1>}, {transform_indices = @transform_3, window_bounds = array<i64: 1, 32, 96>}, {transform_indices = @transform_4, window_bounds = array<i64: 1, 1, 96>}, {transform_indices = @transform_5, window_bounds = array<i64: 1, 2, 16, 32>}, {transform_indices = @transform_6, window_bounds = array<i64: 1, 1, 32>}, {transform_indices = @transform_7, window_bounds = array<i64: 1, 1, 32>}, {transform_indices = @transform_8, window_bounds = array<i64: 1, 1, 32>}, {transform_indices = @transform_9, window_bounds = array<i64: 1, 288, 64>}, {transform_indices = @transform_10, window_bounds = array<i64: 1, 1, 64>}, {transform_indices = @transform_11, window_bounds = array<i64: 1, 64, 32>}, {transform_indices = @transform_12, window_bounds = array<i64: 1, 1, 32>}, {transform_indices = @transform_13, window_bounds = array<i64: 1, 1, 32>}, {transform_indices = @transform_14, window_bounds = array<i64: 1, 1, 32>}, {transform_indices = @transform_15, window_bounds = array<i64: 1, 16, 32>}]} {
    %c0_i32 = arith.constant 0 : i32
    %0 = arith.cmpi eq, %arg1, %c0_i32 : i32
    %1 = arith.extui %0 : i1 to i32
    %c0_i32_0 = arith.constant 0 : i32
    %2 = arith.cmpi ne, %1, %c0_i32_0 : i32
    scf.if %2 {
      %c0_76 = arith.constant 0 : index
      %c0_77 = arith.constant 0 : index
      %c0_78 = arith.constant 0 : index
      %171 = vector.load %arg2[%c0_76, %c0_77, %c0_78] : memref<1x16x32xf32, #tpu.memory_space<vmem>>, vector<1x16x32xf32>
      %172 = vector.shape_cast %171 : vector<1x16x32xf32> to vector<16x32xf32>
      %c0_79 = arith.constant 0 : index
      %c0_80 = arith.constant 0 : index
      %c0_81 = arith.constant 0 : index
      %173 = vector.load %arg17[%c0_79, %c0_80, %c0_81] : memref<1x16x32xf32, #tpu.memory_space<vmem>>, vector<1x16x32xf32>
      %174 = vector.shape_cast %173 : vector<1x16x32xf32> to vector<16x32xf32>
      %175 = vector.shape_cast %172 : vector<16x32xf32> to vector<1x16x32xf32>
      tpu.vector_store %arg17[%c0_79, %c0_80, %c0_81], %175 {strides = array<i32>} : memref<1x16x32xf32, #tpu.memory_space<vmem>>, vector<1x16x32xf32>,
    } else {
    }
    %c0 = arith.constant 0 : index
    %c0_1 = arith.constant 0 : index
    %c0_2 = arith.constant 0 : index
    %3 = vector.load %arg17[%c0, %c0_1, %c0_2] : memref<1x16x32xf32, #tpu.memory_space<vmem>>, vector<1x16x32xf32>
    %4 = vector.shape_cast %3 : vector<1x16x32xf32> to vector<16x32xf32>
    %c0_3 = arith.constant 0 : index
    %c0_4 = arith.constant 0 : index
    %c0_5 = arith.constant 0 : index
    %5 = vector.load %arg3[%c0_3, %c0_4, %c0_5] : memref<1x1x16xf32, #tpu.memory_space<vmem>>, vector<1x1x16xf32>
    %6 = vector.shape_cast %5 : vector<1x1x16xf32> to vector<1x16xf32>
    %c0_6 = arith.constant 0 : index
    %c0_7 = arith.constant 0 : index
    %c0_8 = arith.constant 0 : index
    %7 = vector.load %arg4[%c0_6, %c0_7, %c0_8] : memref<1x16x1xf32, #tpu.memory_space<vmem>>, vector<1x16x1xf32>
    %8 = vector.shape_cast %7 : vector<1x16x1xf32> to vector<16x1xf32>
    %9 = arith.truncf %4 : vector<16x32xf32> to vector<16x32xbf16>
    %c0_9 = arith.constant 0 : index
    %c0_10 = arith.constant 0 : index
    %c0_11 = arith.constant 0 : index
    %10 = vector.load %arg5[%c0_9, %c0_10, %c0_11] : memref<1x32x96xbf16, #tpu.memory_space<vmem>>, vector<1x32x96xbf16>
    %11 = vector.shape_cast %10 : vector<1x32x96xbf16> to vector<32x96xbf16>
    %cst = arith.constant dense<0.000000e+00> : vector<16x96xf32>
    %12 = tpu.matmul %9, %11, %cst {dimension_numbers = #tpu.dot_dimension_numbers<[1], [0], [0], [1], [0, 0, 1, 1], [], []>} : vector<16x32xbf16>, vector<32x96xbf16>, vector<16x96xf32> -> vector<16x96xf32>
    %c0_12 = arith.constant 0 : index
    %c0_13 = arith.constant 0 : index
    %c0_14 = arith.constant 0 : index
    %13 = vector.load %arg6[%c0_12, %c0_13, %c0_14] : memref<1x1x96xf32, #tpu.memory_space<vmem>>, vector<1x1x96xf32>
    %14 = vector.shape_cast %13 : vector<1x1x96xf32> to vector<1x96xf32>
    %15 = vector.broadcast %14 : vector<1x96xf32> to vector<16x96xf32>
    %16 = arith.addf %12, %15 : vector<16x96xf32>
    %c0_15 = arith.constant 0 : index
    %c0_16 = arith.constant 0 : index
    %c0_17 = arith.constant 0 : index
    %c0_18 = arith.constant 0 : index
    %17 = vector.load %arg7[%c0_15, %c0_16, %c0_17, %c0_18] : memref<1x2x16x32xbf16, #tpu.memory_space<vmem>>, vector<1x2x16x32xbf16>
    %18 = vector.shape_cast %17 : vector<1x2x16x32xbf16> to vector<2x16x32xbf16>
    %cst_19 = arith.constant 0.000000e+00 : f32
    %19 = vector.broadcast %cst_19 : f32 to vector<16x32xf32>
    %c0_20 = arith.constant 0 : index
    %c0_21 = arith.constant 0 : index
    %c0_22 = arith.constant 0 : index
    %20 = vector.load %arg8[%c0_20, %c0_21, %c0_22] : memref<1x1x32xf32, #tpu.memory_space<vmem>>, vector<1x1x32xf32>
    %21 = vector.shape_cast %20 : vector<1x1x32xf32> to vector<1x32xf32>
    %22 = vector.broadcast %21 : vector<1x32xf32> to vector<16x32xf32>
    %23 = arith.addf %19, %22 : vector<16x32xf32>
    %24 = vector.extract_strided_slice %16 {offsets = [0, 0], sizes = [16, 16], strides = [1, 1]} : vector<16x96xf32> to vector<16x16xf32>
    %25 = arith.truncf %24 : vector<16x16xf32> to vector<16x16xbf16>
    %26 = vector.extract_strided_slice %16 {offsets = [0, 32], sizes = [16, 16], strides = [1, 1]} : vector<16x96xf32> to vector<16x16xf32>
    %27 = arith.truncf %26 : vector<16x16xf32> to vector<16x16xbf16>
    %28 = vector.extract_strided_slice %16 {offsets = [0, 64], sizes = [16, 16], strides = [1, 1]} : vector<16x96xf32> to vector<16x16xf32>
    %29 = arith.truncf %28 : vector<16x16xf32> to vector<16x16xbf16>
    "tpu.trace_start"() <{level = 10 : i32, message = "ld,md->lm"}> : () -> ()
    %cst_23 = arith.constant dense<0.000000e+00> : vector<16x16xf32>
    %30 = tpu.matmul %25, %27, %cst_23 {dimension_numbers = #tpu.dot_dimension_numbers<[1], [1], [0], [0], [0, 0, 1, 0], [], []>} : vector<16x16xbf16>, vector<16x16xbf16>, vector<16x16xf32> -> vector<16x16xf32>
    "tpu.trace_stop"() : () -> ()
    %cst_24 = arith.constant 2.500000e-01 : f32
    %31 = vector.broadcast %cst_24 : f32 to vector<16x16xf32>
    %32 = arith.mulf %30, %31 : vector<16x16xf32>
    %33 = vector.broadcast %6 : vector<1x16xf32> to vector<16x16xf32>
    %34 = arith.addf %32, %33 : vector<16x16xf32>
    %cst_25 = arith.constant dense<0xFF800000> : vector<16xf32>
    %35 = vector.multi_reduction <maximumf>, %34, %cst_25 [1] : vector<16x16xf32> to vector<16xf32>
    %36 = vector.shape_cast %35 : vector<16xf32> to vector<16x1xf32>
    %37 = vector.broadcast %36 : vector<16x1xf32> to vector<16x16xf32>
    %38 = arith.subf %34, %37 : vector<16x16xf32>
    %39 = math.exp %38 : vector<16x16xf32>
    %cst_26 = arith.constant dense<0.000000e+00> : vector<16xf32>
    %40 = vector.multi_reduction <add>, %39, %cst_26 [1] : vector<16x16xf32> to vector<16xf32>
    %41 = vector.shape_cast %40 : vector<16xf32> to vector<16x1xf32>
    %42 = tpu.reciprocal %41 {approx = true} : vector<16x1xf32> -> vector<16x1xf32>
    %43 = vector.broadcast %42 : vector<16x1xf32> to vector<16x16xf32>
    %44 = arith.mulf %39, %43 : vector<16x16xf32>
    %45 = arith.truncf %44 : vector<16x16xf32> to vector<16x16xbf16>
    %cst_27 = arith.constant dense<0.000000e+00> : vector<16x16xf32>
    %46 = tpu.matmul %45, %29, %cst_27 {dimension_numbers = #tpu.dot_dimension_numbers<[1], [0], [0], [1], [0, 0, 1, 1], [], []>} : vector<16x16xbf16>, vector<16x16xbf16>, vector<16x16xf32> -> vector<16x16xf32>
    %47 = arith.truncf %46 : vector<16x16xf32> to vector<16x16xbf16>
    %48 = vector.extract_strided_slice %18 {offsets = [0, 0, 0], sizes = [1, 16, 32], strides = [1, 1, 1]} : vector<2x16x32xbf16> to vector<1x16x32xbf16>
    %49 = vector.shape_cast %48 : vector<1x16x32xbf16> to vector<16x32xbf16>
    %cst_28 = arith.constant dense<0.000000e+00> : vector<16x32xf32>
    %50 = tpu.matmul %47, %49, %cst_28 {dimension_numbers = #tpu.dot_dimension_numbers<[1], [0], [0], [1], [0, 0, 1, 1], [], []>} : vector<16x16xbf16>, vector<16x32xbf16>, vector<16x32xf32> -> vector<16x32xf32>
    %51 = arith.addf %23, %50 : vector<16x32xf32>
    %52 = vector.extract_strided_slice %16 {offsets = [0, 16], sizes = [16, 16], strides = [1, 1]} : vector<16x96xf32> to vector<16x16xf32>
    %53 = arith.truncf %52 : vector<16x16xf32> to vector<16x16xbf16>
    %54 = vector.extract_strided_slice %16 {offsets = [0, 48], sizes = [16, 16], strides = [1, 1]} : vector<16x96xf32> to vector<16x16xf32>
    %55 = arith.truncf %54 : vector<16x16xf32> to vector<16x16xbf16>
    %56 = vector.extract_strided_slice %16 {offsets = [0, 80], sizes = [16, 16], strides = [1, 1]} : vector<16x96xf32> to vector<16x16xf32>
    %57 = arith.truncf %56 : vector<16x16xf32> to vector<16x16xbf16>
    "tpu.trace_start"() <{level = 10 : i32, message = "ld,md->lm"}> : () -> ()
    %cst_29 = arith.constant dense<0.000000e+00> : vector<16x16xf32>
    %58 = tpu.matmul %53, %55, %cst_29 {dimension_numbers = #tpu.dot_dimension_numbers<[1], [1], [0], [0], [0, 0, 1, 0], [], []>} : vector<16x16xbf16>, vector<16x16xbf16>, vector<16x16xf32> -> vector<16x16xf32>
    "tpu.trace_stop"() : () -> ()
    %cst_30 = arith.constant 2.500000e-01 : f32
    %59 = vector.broadcast %cst_30 : f32 to vector<16x16xf32>
    %60 = arith.mulf %58, %59 : vector<16x16xf32>
    %61 = vector.broadcast %6 : vector<1x16xf32> to vector<16x16xf32>
    %62 = arith.addf %60, %61 : vector<16x16xf32>
    %cst_31 = arith.constant dense<0xFF800000> : vector<16xf32>
    %63 = vector.multi_reduction <maximumf>, %62, %cst_31 [1] : vector<16x16xf32> to vector<16xf32>
    %64 = vector.shape_cast %63 : vector<16xf32> to vector<16x1xf32>
    %65 = vector.broadcast %64 : vector<16x1xf32> to vector<16x16xf32>
    %66 = arith.subf %62, %65 : vector<16x16xf32>
    %67 = math.exp %66 : vector<16x16xf32>
    %cst_32 = arith.constant dense<0.000000e+00> : vector<16xf32>
    %68 = vector.multi_reduction <add>, %67, %cst_32 [1] : vector<16x16xf32> to vector<16xf32>
    %69 = vector.shape_cast %68 : vector<16xf32> to vector<16x1xf32>
    %70 = tpu.reciprocal %69 {approx = true} : vector<16x1xf32> -> vector<16x1xf32>
    %71 = vector.broadcast %70 : vector<16x1xf32> to vector<16x16xf32>
    %72 = arith.mulf %67, %71 : vector<16x16xf32>
    %73 = arith.truncf %72 : vector<16x16xf32> to vector<16x16xbf16>
    %cst_33 = arith.constant dense<0.000000e+00> : vector<16x16xf32>
    %74 = tpu.matmul %73, %57, %cst_33 {dimension_numbers = #tpu.dot_dimension_numbers<[1], [0], [0], [1], [0, 0, 1, 1], [], []>} : vector<16x16xbf16>, vector<16x16xbf16>, vector<16x16xf32> -> vector<16x16xf32>
    %75 = arith.truncf %74 : vector<16x16xf32> to vector<16x16xbf16>
    %76 = vector.extract_strided_slice %18 {offsets = [1, 0, 0], sizes = [1, 16, 32], strides = [1, 1, 1]} : vector<2x16x32xbf16> to vector<1x16x32xbf16>
    %77 = vector.shape_cast %76 : vector<1x16x32xbf16> to vector<16x32xbf16>
    %cst_34 = arith.constant dense<0.000000e+00> : vector<16x32xf32>
    %78 = tpu.matmul %75, %77, %cst_34 {dimension_numbers = #tpu.dot_dimension_numbers<[1], [0], [0], [1], [0, 0, 1, 1], [], []>} : vector<16x16xbf16>, vector<16x32xbf16>, vector<16x32xf32> -> vector<16x32xf32>
    %79 = arith.addf %51, %78 : vector<16x32xf32>
    %80 = arith.addf %79, %4 : vector<16x32xf32>
    %c0_35 = arith.constant 0 : index
    %c0_36 = arith.constant 0 : index
    %c0_37 = arith.constant 0 : index
    %81 = vector.load %arg9[%c0_35, %c0_36, %c0_37] : memref<1x1x32xf32, #tpu.memory_space<vmem>>, vector<1x1x32xf32>
    %82 = vector.shape_cast %81 : vector<1x1x32xf32> to vector<1x32xf32>
    %c0_38 = arith.constant 0 : index
    %c0_39 = arith.constant 0 : index
    %c0_40 = arith.constant 0 : index
    %83 = vector.load %arg10[%c0_38, %c0_39, %c0_40] : memref<1x1x32xf32, #tpu.memory_space<vmem>>, vector<1x1x32xf32>
    %84 = vector.shape_cast %83 : vector<1x1x32xf32> to vector<1x32xf32>
    %cst_41 = arith.constant dense<0.000000e+00> : vector<16xf32>
    %85 = vector.multi_reduction <add>, %80, %cst_41 [1] : vector<16x32xf32> to vector<16xf32>
    %86 = vector.shape_cast %85 : vector<16xf32> to vector<16x1xf32>
    %cst_42 = arith.constant 3.200000e+01 : f32
    %87 = vector.broadcast %cst_42 : f32 to vector<16x1xf32>
    %88 = arith.divf %86, %87 : vector<16x1xf32>
    %89 = vector.broadcast %88 : vector<16x1xf32> to vector<16x32xf32>
    %90 = arith.subf %80, %89 : vector<16x32xf32>
    %91 = arith.mulf %90, %90 : vector<16x32xf32>
    %cst_43 = arith.constant dense<0.000000e+00> : vector<16xf32>
    %92 = vector.multi_reduction <add>, %91, %cst_43 [1] : vector<16x32xf32> to vector<16xf32>
    %93 = vector.shape_cast %92 : vector<16xf32> to vector<16x1xf32>
    %cst_44 = arith.constant 3.200000e+01 : f32
    %94 = vector.broadcast %cst_44 : f32 to vector<16x1xf32>
    %95 = arith.divf %93, %94 : vector<16x1xf32>
    %96 = vector.broadcast %88 : vector<16x1xf32> to vector<16x32xf32>
    %97 = arith.subf %80, %96 : vector<16x32xf32>
    %cst_45 = arith.constant 9.99999974E-6 : f32
    %98 = vector.broadcast %cst_45 : f32 to vector<16x1xf32>
    %99 = arith.addf %95, %98 : vector<16x1xf32>
    %100 = math.rsqrt %99 : vector<16x1xf32>
    %101 = vector.broadcast %100 : vector<16x1xf32> to vector<16x32xf32>
    %102 = arith.mulf %97, %101 : vector<16x32xf32>
    %103 = vector.broadcast %82 : vector<1x32xf32> to vector<16x32xf32>
    %104 = arith.mulf %102, %103 : vector<16x32xf32>
    %105 = vector.broadcast %84 : vector<1x32xf32> to vector<16x32xf32>
    %106 = arith.addf %104, %105 : vector<16x32xf32>
    %107 = vector.broadcast %8 : vector<16x1xf32> to vector<16x32xf32>
    %108 = arith.mulf %106, %107 : vector<16x32xf32>
    %cst_46 = arith.constant 0.000000e+00 : f32
    %109 = vector.broadcast %cst_46 : f32 to vector<4x32xf32>
    %110 = tpu.concatenate %109, %108, %109 in 0 : vector<4x32xf32>, vector<16x32xf32>, vector<4x32xf32> -> vector<24x32xf32>
    %111 = vector.extract_strided_slice %110 {offsets = [0, 0], sizes = [16, 32], strides = [1, 1]} : vector<24x32xf32> to vector<16x32xf32>
    %112 = vector.extract_strided_slice %110 {offsets = [1, 0], sizes = [16, 32], strides = [1, 1]} : vector<24x32xf32> to vector<16x32xf32>
    %113 = vector.extract_strided_slice %110 {offsets = [2, 0], sizes = [16, 32], strides = [1, 1]} : vector<24x32xf32> to vector<16x32xf32>
    %114 = vector.extract_strided_slice %110 {offsets = [3, 0], sizes = [16, 32], strides = [1, 1]} : vector<24x32xf32> to vector<16x32xf32>
    %115 = vector.extract_strided_slice %110 {offsets = [4, 0], sizes = [16, 32], strides = [1, 1]} : vector<24x32xf32> to vector<16x32xf32>
    %116 = vector.extract_strided_slice %110 {offsets = [5, 0], sizes = [16, 32], strides = [1, 1]} : vector<24x32xf32> to vector<16x32xf32>
    %117 = vector.extract_strided_slice %110 {offsets = [6, 0], sizes = [16, 32], strides = [1, 1]} : vector<24x32xf32> to vector<16x32xf32>
    %118 = vector.extract_strided_slice %110 {offsets = [7, 0], sizes = [16, 32], strides = [1, 1]} : vector<24x32xf32> to vector<16x32xf32>
    %119 = vector.extract_strided_slice %110 {offsets = [8, 0], sizes = [16, 32], strides = [1, 1]} : vector<24x32xf32> to vector<16x32xf32>
    %120 = tpu.concatenate %111, %112, %113, %114, %115, %116, %117, %118, %119 in 1 : vector<16x32xf32>, vector<16x32xf32>, vector<16x32xf32>, vector<16x32xf32>, vector<16x32xf32>, vector<16x32xf32>, vector<16x32xf32>, vector<16x32xf32>, vector<16x32xf32> -> vector<16x288xf32>
    %121 = arith.truncf %120 : vector<16x288xf32> to vector<16x288xbf16>
    %c0_47 = arith.constant 0 : index
    %c0_48 = arith.constant 0 : index
    %c0_49 = arith.constant 0 : index
    %122 = vector.load %arg11[%c0_47, %c0_48, %c0_49] : memref<1x288x64xbf16, #tpu.memory_space<vmem>>, vector<1x288x64xbf16>
    %123 = vector.shape_cast %122 : vector<1x288x64xbf16> to vector<288x64xbf16>
    %cst_50 = arith.constant dense<0.000000e+00> : vector<16x64xf32>
    %124 = tpu.matmul %121, %123, %cst_50 {dimension_numbers = #tpu.dot_dimension_numbers<[1], [0], [0], [1], [0, 0, 1, 1], [], []>} : vector<16x288xbf16>, vector<288x64xbf16>, vector<16x64xf32> -> vector<16x64xf32>
    %c0_51 = arith.constant 0 : index
    %c0_52 = arith.constant 0 : index
    %c0_53 = arith.constant 0 : index
    %125 = vector.load %arg12[%c0_51, %c0_52, %c0_53] : memref<1x1x64xf32, #tpu.memory_space<vmem>>, vector<1x1x64xf32>
    %126 = vector.shape_cast %125 : vector<1x1x64xf32> to vector<1x64xf32>
    %127 = vector.broadcast %126 : vector<1x64xf32> to vector<16x64xf32>
    %128 = arith.addf %124, %127 : vector<16x64xf32>
    %cst_54 = arith.constant 0.000000e+00 : f32
    %129 = vector.broadcast %cst_54 : f32 to vector<16x64xf32>
    %130 = arith.maximumf %128, %129 : vector<16x64xf32>
    %131 = arith.truncf %130 : vector<16x64xf32> to vector<16x64xbf16>
    %c0_55 = arith.constant 0 : index
    %c0_56 = arith.constant 0 : index
    %c0_57 = arith.constant 0 : index
    %132 = vector.load %arg13[%c0_55, %c0_56, %c0_57] : memref<1x64x32xbf16, #tpu.memory_space<vmem>>, vector<1x64x32xbf16>
    %133 = vector.shape_cast %132 : vector<1x64x32xbf16> to vector<64x32xbf16>
    %cst_58 = arith.constant dense<0.000000e+00> : vector<16x32xf32>
    %134 = tpu.matmul %131, %133, %cst_58 {dimension_numbers = #tpu.dot_dimension_numbers<[1], [0], [0], [1], [0, 0, 1, 1], [], []>} : vector<16x64xbf16>, vector<64x32xbf16>, vector<16x32xf32> -> vector<16x32xf32>
    %c0_59 = arith.constant 0 : index
    %c0_60 = arith.constant 0 : index
    %c0_61 = arith.constant 0 : index
    %135 = vector.load %arg14[%c0_59, %c0_60, %c0_61] : memref<1x1x32xf32, #tpu.memory_space<vmem>>, vector<1x1x32xf32>
    %136 = vector.shape_cast %135 : vector<1x1x32xf32> to vector<1x32xf32>
    %137 = vector.broadcast %136 : vector<1x32xf32> to vector<16x32xf32>
    %138 = arith.addf %134, %137 : vector<16x32xf32>
    %139 = arith.addf %138, %108 : vector<16x32xf32>
    %c0_62 = arith.constant 0 : index
    %c0_63 = arith.constant 0 : index
    %c0_64 = arith.constant 0 : index
    %140 = vector.load %arg15[%c0_62, %c0_63, %c0_64] : memref<1x1x32xf32, #tpu.memory_space<vmem>>, vector<1x1x32xf32>
    %141 = vector.shape_cast %140 : vector<1x1x32xf32> to vector<1x32xf32>
    %c0_65 = arith.constant 0 : index
    %c0_66 = arith.constant 0 : index
    %c0_67 = arith.constant 0 : index
    %142 = vector.load %arg16[%c0_65, %c0_66, %c0_67] : memref<1x1x32xf32, #tpu.memory_space<vmem>>, vector<1x1x32xf32>
    %143 = vector.shape_cast %142 : vector<1x1x32xf32> to vector<1x32xf32>
    %cst_68 = arith.constant dense<0.000000e+00> : vector<16xf32>
    %144 = vector.multi_reduction <add>, %139, %cst_68 [1] : vector<16x32xf32> to vector<16xf32>
    %145 = vector.shape_cast %144 : vector<16xf32> to vector<16x1xf32>
    %cst_69 = arith.constant 3.200000e+01 : f32
    %146 = vector.broadcast %cst_69 : f32 to vector<16x1xf32>
    %147 = arith.divf %145, %146 : vector<16x1xf32>
    %148 = vector.broadcast %147 : vector<16x1xf32> to vector<16x32xf32>
    %149 = arith.subf %139, %148 : vector<16x32xf32>
    %150 = arith.mulf %149, %149 : vector<16x32xf32>
    %cst_70 = arith.constant dense<0.000000e+00> : vector<16xf32>
    %151 = vector.multi_reduction <add>, %150, %cst_70 [1] : vector<16x32xf32> to vector<16xf32>
    %152 = vector.shape_cast %151 : vector<16xf32> to vector<16x1xf32>
    %cst_71 = arith.constant 3.200000e+01 : f32
    %153 = vector.broadcast %cst_71 : f32 to vector<16x1xf32>
    %154 = arith.divf %152, %153 : vector<16x1xf32>
    %155 = vector.broadcast %147 : vector<16x1xf32> to vector<16x32xf32>
    %156 = arith.subf %139, %155 : vector<16x32xf32>
    %cst_72 = arith.constant 9.99999974E-6 : f32
    %157 = vector.broadcast %cst_72 : f32 to vector<16x1xf32>
    %158 = arith.addf %154, %157 : vector<16x1xf32>
    %159 = math.rsqrt %158 : vector<16x1xf32>
    %160 = vector.broadcast %159 : vector<16x1xf32> to vector<16x32xf32>
    %161 = arith.mulf %156, %160 : vector<16x32xf32>
    %162 = vector.broadcast %141 : vector<1x32xf32> to vector<16x32xf32>
    %163 = arith.mulf %161, %162 : vector<16x32xf32>
    %164 = vector.broadcast %143 : vector<1x32xf32> to vector<16x32xf32>
    %165 = arith.addf %163, %164 : vector<16x32xf32>
    %166 = vector.broadcast %8 : vector<16x1xf32> to vector<16x32xf32>
    %167 = arith.mulf %165, %166 : vector<16x32xf32>
    %c0_73 = arith.constant 0 : index
    %c0_74 = arith.constant 0 : index
    %c0_75 = arith.constant 0 : index
    %168 = vector.load %arg17[%c0_73, %c0_74, %c0_75] : memref<1x16x32xf32, #tpu.memory_space<vmem>>, vector<1x16x32xf32>
    %169 = vector.shape_cast %168 : vector<1x16x32xf32> to vector<16x32xf32>
    %170 = vector.shape_cast %167 : vector<16x32xf32> to vector<1x16x32xf32>
    tpu.vector_store %arg17[%c0_73, %c0_74, %c0_75], %170 {strides = array<i32>} : memref<1x16x32xf32, #tpu.memory_space<vmem>>, vector<1x16x32xf32>,
    return
  }
  func.func @transform_0(%arg0: i32, %arg1: i32) -> (i32, i32, i32) {
    %c0_i32 = arith.constant 0 : i32
    %c0_i32_0 = arith.constant 0 : i32
    %c0_i32_1 = arith.constant 0 : i32
    return %arg0, %c0_i32, %c0_i32_0 : i32, i32, i32
  }
  func.func @transform_1(%arg0: i32, %arg1: i32) -> (i32, i32, i32) {
    %c0_i32 = arith.constant 0 : i32
    %c0_i32_0 = arith.constant 0 : i32
    %c0_i32_1 = arith.constant 0 : i32
    return %arg0, %c0_i32, %c0_i32_0 : i32, i32, i32
  }
  func.func @transform_2(%arg0: i32, %arg1: i32) -> (i32, i32, i32) {
    %c0_i32 = arith.constant 0 : i32
    %c0_i32_0 = arith.constant 0 : i32
    %c0_i32_1 = arith.constant 0 : i32
    return %arg0, %c0_i32, %c0_i32_0 : i32, i32, i32
  }
  func.func @transform_3(%arg0: i32, %arg1: i32) -> (i32, i32, i32) {
    %c0_i32 = arith.constant 0 : i32
    %c0_i32_0 = arith.constant 0 : i32
    %c0_i32_1 = arith.constant 0 : i32
    return %arg1, %c0_i32, %c0_i32_0 : i32, i32, i32
  }
  func.func @transform_4(%arg0: i32, %arg1: i32) -> (i32, i32, i32) {
    %c0_i32 = arith.constant 0 : i32
    %c0_i32_0 = arith.constant 0 : i32
    %c0_i32_1 = arith.constant 0 : i32
    return %arg1, %c0_i32, %c0_i32_0 : i32, i32, i32
  }
  func.func @transform_5(%arg0: i32, %arg1: i32) -> (i32, i32, i32, i32) {
    %c0_i32 = arith.constant 0 : i32
    %c0_i32_0 = arith.constant 0 : i32
    %c0_i32_1 = arith.constant 0 : i32
    %c0_i32_2 = arith.constant 0 : i32
    return %arg1, %c0_i32, %c0_i32_0, %c0_i32_1 : i32, i32, i32, i32
  }
  func.func @transform_6(%arg0: i32, %arg1: i32) -> (i32, i32, i32) {
    %c0_i32 = arith.constant 0 : i32
    %c0_i32_0 = arith.constant 0 : i32
    %c0_i32_1 = arith.constant 0 : i32
    return %arg1, %c0_i32, %c0_i32_0 : i32, i32, i32
  }
  func.func @transform_7(%arg0: i32, %arg1: i32) -> (i32, i32, i32) {
    %c0_i32 = arith.constant 0 : i32
    %c0_i32_0 = arith.constant 0 : i32
    %c0_i32_1 = arith.constant 0 : i32
    return %arg1, %c0_i32, %c0_i32_0 : i32, i32, i32
  }
  func.func @transform_8(%arg0: i32, %arg1: i32) -> (i32, i32, i32) {
    %c0_i32 = arith.constant 0 : i32
    %c0_i32_0 = arith.constant 0 : i32
    %c0_i32_1 = arith.constant 0 : i32
    return %arg1, %c0_i32, %c0_i32_0 : i32, i32, i32
  }
  func.func @transform_9(%arg0: i32, %arg1: i32) -> (i32, i32, i32) {
    %c0_i32 = arith.constant 0 : i32
    %c0_i32_0 = arith.constant 0 : i32
    %c0_i32_1 = arith.constant 0 : i32
    return %arg1, %c0_i32, %c0_i32_0 : i32, i32, i32
  }
  func.func @transform_10(%arg0: i32, %arg1: i32) -> (i32, i32, i32) {
    %c0_i32 = arith.constant 0 : i32
    %c0_i32_0 = arith.constant 0 : i32
    %c0_i32_1 = arith.constant 0 : i32
    return %arg1, %c0_i32, %c0_i32_0 : i32, i32, i32
  }
  func.func @transform_11(%arg0: i32, %arg1: i32) -> (i32, i32, i32) {
    %c0_i32 = arith.constant 0 : i32
    %c0_i32_0 = arith.constant 0 : i32
    %c0_i32_1 = arith.constant 0 : i32
    return %arg1, %c0_i32, %c0_i32_0 : i32, i32, i32
  }
  func.func @transform_12(%arg0: i32, %arg1: i32) -> (i32, i32, i32) {
    %c0_i32 = arith.constant 0 : i32
    %c0_i32_0 = arith.constant 0 : i32
    %c0_i32_1 = arith.constant 0 : i32
    return %arg1, %c0_i32, %c0_i32_0 : i32, i32, i32
  }
  func.func @transform_13(%arg0: i32, %arg1: i32) -> (i32, i32, i32) {
    %c0_i32 = arith.constant 0 : i32
    %c0_i32_0 = arith.constant 0 : i32
    %c0_i32_1 = arith.constant 0 : i32
    return %arg1, %c0_i32, %c0_i32_0 : i32, i32, i32
  }
  func.func @transform_14(%arg0: i32, %arg1: i32) -> (i32, i32, i32) {
    %c0_i32 = arith.constant 0 : i32
    %c0_i32_0 = arith.constant 0 : i32
    %c0_i32_1 = arith.constant 0 : i32
    return %arg1, %c0_i32, %c0_i32_0 : i32, i32, i32
  }
  func.func @transform_15(%arg0: i32, %arg1: i32) -> (i32, i32, i32) {
    %c0_i32 = arith.constant 0 : i32
    %c0_i32_0 = arith.constant 0 : i32
    %c0_i32_1 = arith.constant 0 : i32
    return %arg0, %c0_i32, %c0_i32_0 : i32, i32, i32
  }
}

</mosaic_0001>

<bundles_post_ra>
// kernel: tpu_custom_call.1
= control target key start
LH: loop header
LB: loop body
LE: loop exit
PB: predicated region body
PF: predicated region fallthrough
CT: control target
= control target key end

     0   :  { %s2935_s0 = inlined_call_operand.vmem [shape: f32[2,16,32], index: 0, kind: input, shape index: {}]   ;;  %s2936_s1 = inlined_call_operand.vmem [shape: f32[2,1,16], index: 1, kind: input, shape index: {}]   ;;  %s2937_s2 = inlined_call_operand.vmem [shape: f32[2,16,1], index: 2, kind: input, shape index: {}]   ;;  %s2938_s3 = inlined_call_operand.vmem [shape: bf16[2,32,96], index: 3, kind: input, shape index: {}]   ;;  %s2939_s4 = inlined_call_operand.vmem [shape: f32[2,1,96], index: 4, kind: input, shape index: {}]   ;;  %s2940_s5 = inlined_call_operand.vmem [shape: bf16[2,2,16,32], index: 5, kind: input, shape index: {}]   ;;  %s2941_s6 = inlined_call_operand.vmem [shape: f32[2,1,32], index: 6, kind: input, shape index: {}]   ;;  %s2942_s7 = inlined_call_operand.vmem [shape: f32[2,1,32], index: 7, kind: input, shape index: {}]   ;;  %s2943_s8 = inlined_call_operand.vmem [shape: f32[2,1,32], index: 8, kind: input, shape index: {}]   ;;  %s2944_s9 = inlined_call_operand.vmem [shape: bf16[2,288,64], index: 9, kind: input, shape index: {}]   ;;  %s2945_s10 = inlined_call_operand.vmem [shape: f32[2,1,64], index: 10, kind: input, shape index: {}]   ;;  %s2946_s11 = inlined_call_operand.vmem [shape: bf16[2,64,32], index: 11, kind: input, shape index: {}]   ;;  %s2947_s12 = inlined_call_operand.vmem [shape: f32[2,1,32], index: 12, kind: input, shape index: {}]   ;;  %s2948_s13 = inlined_call_operand.vmem [shape: f32[2,1,32], index: 13, kind: input, shape index: {}]   ;;  %s2949_s14 = inlined_call_operand.vmem [shape: f32[2,1,32], index: 14, kind: input, shape index: {}]   ;;  %s2950_s15 = inlined_call_operand.hbm [shape: f32[2,16,32], index: 15, kind: output, shape index: {}]  }
   0x1   :  { %2967 = sst [smem:[#allocation19_spill]] %s2935_s0 }
   0x2   :  { %2968 = sst [smem:[#allocation20_spill]] %s2936_s1 }
   0x3   :  { %2969 = sst [smem:[#allocation21_spill]] %s2937_s2 }
   0x4   :  { %2970 = sst [smem:[#allocation22_spill]] %s2938_s3 }
   0x5   :  { %2971 = sst [smem:[#allocation23_spill]] %s2940_s5 }
   0x6   :  { %2972 = sst [smem:[#allocation24_spill]] %s2943_s8 }
   0x7   :  { %2973 = sst [smem:[#allocation25_spill]] %s2945_s10 }
   0x8   :  { %2974 = sst [smem:[#allocation26_spill]] %s2948_s13 }
   0x9   :  { %2975 = sst [smem:[#allocation27_spill]] %s2949_s14 }
   0xa   :  { %2976 = sst [smem:[#allocation28_spill]] %s2950_s15 }
   0xb   :  { %20 = vsyncpa [#allocation3], 0 }
   0xc   :  { %22 = vsyncpa [#allocation3 + $0x1], 0  ;;  %s2493_s18 = smov 0   ;;  %s2495_s19 = smov 0  }
   0xd   :  { %s2497_s20 = smov 0   ;;  %s2499_s21 = smov 0  }
   0xe   :  { %s2501_s22 = smov 0   ;;  %s2503_s23 = smov 0  }
   0xf   :  { %s2505_s24 = smov 0   ;;  %s2507_s25 = smov 0  }
  0x10 LB: > { %2977 = sst [smem:[#allocation5_spill]] %s2371_s18  ;;  %s1958_s26 = sadd.s32 4294967295, %s2399_s25   ;;  %s2399_s25 = sphi %s2507_s25, %s28_s25   ;;  %s2395_s24 = sphi %s2505_s24, %s3029_s24   ;;  %s2391_s23 = sphi %s2503_s23, %s3028_s23   ;;  %s2387_s22 = sphi %s2501_s22, %s3027_s22   ;;  %s2383_s21 = sphi %s2499_s21, %s3026_s21   ;;  %s2379_s20 = sphi %s2497_s20, %s3025_s20   ;;  %s2375_s19 = sphi %s2495_s19, %s3024_s19   ;;  %s2371_s18 = sphi %s2493_s18, %s3023_s18  }
  0x11   : > { %2978 = sst [smem:[#allocation6_spill]] %s2375_s19  ;;  %s1959_s27 = sadd.s32 4294967294, %s2399_s25  }
  0x12   : > { %2979 = sst [smem:[#allocation7_spill]] %s2379_s20  ;;  %s37_s28 = sadd.s32 1, %s2391_s23 }
  0x13   : > { %2980 = sst [smem:[#allocation8_spill]] %s2383_s21  ;;  %p38_p0 = scmp.ge.s32.totalorder %s37_s28, 2 }
  0x14   : > { %2981 = sst [smem:[#allocation9_spill]] %s2387_s22  ;;  %s40_s29 = sadd.s32 1, %s2395_s24 }
  0x15   : > { %2982 = sst [smem:[#allocation10_spill]] %s2391_s23  ;;  %p447_p1 = scmp.ne.s32.totalorder %s2379_s20, %s2375_s19 }
  0x16   : > { %2983 = sst [smem:[#allocation11_spill]] %s2395_s24  ;;  %p448_p2 = scmp.eq.s32.totalorder %s1958_s26, 3 }
  0x17   : > { %2984 = sst [smem:[#allocation12_spill]] %s2399_s25  ;;  %s3031_s28 = smov (%p38_p0, %s37_s28), 0 }
  0x18   : > { %2985 = sst [smem:[#allocation13_spill]] %s3031_s28  ;;  %s3033_s29 = smov (!%p38_p0, %s40_s29), %s2395_s24 }
  0x19   : > { %p2542_p3 = por %p448_p2, %p447_p1  ;;  %p453_p4 = scmp.ne.s32.totalorder %s2375_s19, %s2371_s18 }
  0x1a   : > { %p42_p5 = scmp.ge.s32.totalorder %s3033_s29, 2  ;;  %p454_p6 = scmp.eq.s32.totalorder %s1959_s27, 3 }
  0x1b   : > { %s2986_s30 = scalar_select %p2542_p3, 1, 0 }
  0x1c   : > { %p1962_p7 = scmp.ge.s32.totalorder %s2399_s25, 1  ;;  %p574_p8 = scmp.lt.s32.totalorder %s2399_s25, 5 }
  0x1d   : > { %2987 = sst [smem:[#allocation14_spill]] %s2986_s30  ;;  %s3035_s29 = smov (%p42_p5, %s3033_s29), 0 }
  0x1e   : > { %2988 = sst [smem:[#allocation15_spill]] %s3035_s29  ;;  %p2552_p9 = por %p454_p6, %p453_p4 }
  0x1f   : > { %p575_p10 = pnand %p1962_p7, %p574_p8  ;;  %s434_s17 = ssub.s32 %s2395_s24, %s3035_s29 }
  0x20   : > { %s2989_s16 = scalar_select %p2552_p9, 1, 0 }
  0x21   : > { %s437_s26 = sadd.s32 1, %s2379_s20  ;;  %p435_p11 = scmp.eq.s32.totalorder %s434_s17, 0 }
  0x22   : > { %2990 = sst [smem:[#allocation16_spill]] %s2989_s16  ;;  %578 = sbr.rel (%p575_p10) target bundleno = 3176 (0xc68), region = 80 }
  0x23   : > { %s2560_s28 = scalar_select %p435_p11, %s2379_s20, %s437_s26  }
  0x25   : > { %2991 = sst [smem:[#allocation17_spill]] %s2560_s28 }
  0x29   : > { %s2955_s27 = sand.u32 1, %s2375_s19   ;;  %p674_p12 = scmp.lt.s32.totalorder %s2387_s22, 1 }
  0x2a   : > { %s1963_s23 = sshll.u32 %s2955_s27, 4  ;;  %p687_p13 = scmp.lt.s32.totalorder %s2383_s21, 1 }
  0x2b   : > { %s2568_s18 = scalar_select %p674_p12, %s2387_s22, 1 }
  0x2c   : > { %s2571_s29 = scalar_select %p687_p13, %s2383_s21, 1 }
  0x2d   : > { %s2025_s17 = sshll.u32 %s2568_s18, 4  ;;  %s2993_s0 = sld [smem:[#allocation19_spill]] }
  0x2e   : > { %s2994_s2 = sld [smem:[#allocation21_spill]]  ;;  %s2027_s19 = sshll.u32 %s2571_s29, 4 }
  0x2f   : > { %s2996_s3 = sld [smem:[#allocation22_spill]]  ;;  %s2997_s5 = sld [smem:[#allocation23_spill]] }
  0x30   : > { %s2140_s14 = smul.u32 144, %s2571_s29  ;;  %s2029_s1 = sshll.u32 %s2571_s29, 5 }
  0x31   : > { %s2625_s25 = scalar_lea.vmem %s2946_s11, %s2029_s1  ;;  %s3000_s15 = sld [smem:[#allocation26_spill]] }
  0x32   : > { %s3001_s10 = sld [smem:[#allocation27_spill]] }
  0x33   : > { %s678_s16 = scalar_lea.vmem %s2993_s0, %s2025_s17 }
  0x34   : > { %s2584_s30 = scalar_lea.vmem %s2994_s2, %s2025_s17 }
  0x35   : > { %2995 = sst [smem:[#allocation18_spill]] %s2584_s30  ;;  %s691_s26 = scalar_lea.vmem %s2996_s3, %s2027_s19 }
  0x36   : > { %s2597_s20 = scalar_lea.vmem %s2997_s5, %s2027_s19  ;;  %s2620_s5 = scalar_lea.vmem %s2944_s9, %s2140_s14 }
  0x37   : > { %s724_s30 = scalar_lea.vmem %s2947_s12, %s2571_s29  ;;  %s727_s13 = scalar_lea.vmem %s3000_s15, %s2571_s29 }
  0x38   : > { %s730_s8 = scalar_lea.vmem %s3001_s10, %s2571_s29  ;;  %s2639_s19 = scalar_lea.vmem [#allocation2], %s1963_s23 }
  0x39   : > { %s3002_s14 = sld [smem:[#allocation8_spill]] }
  0x3f   : > { %p1975_p0 = scmp.ne.s32.totalorder %s3002_s14, 0 }
  0x40   : > { %v736_v0 = vld [vmem:[%s678_s16] sm:$0xff] (!%p1975_p0)  ;;  %vm738_vm0 = vcmask (!%p1975_p0), 261120   ;;  %v737_v1 = vld [vmem:[%s678_s16 + $0x8] sm:$0xff] (!%p1975_p0) }
  0x41   : > { %735 = sbr.rel (%p1975_p0) target bundleno = 72 (0x48), region = 84  ;;  %739 = vst.msk [vmem:[%s2639_s19] sm:$0xff] (!%p1975_p0), %vm738_vm0, %v736_v0  ;;  %740 = vst.msk [vmem:[%s2639_s19 + $0x8] sm:$0xff] (!%p1975_p0), %vm738_vm0, %v737_v1 }
  0x48 PF: > { %v2255_v2 = vld [vmem:[%s691_s26] sm:$0xff]   ;;  %v2401_v3 = vmov 0.0   ;;  %v2256_v4 = vld [vmem:[%s691_s26 + $0x8] sm:$0xff]   ;;  %vm2402_vm1 = vmmov 0   ;;  %vm770_vm2 = vcmask 261120   ;;  %s3003_s10 = scalar_lea.vmem %s2939_s4, %s2571_s29  ;;  %s2403_s23 = smov 96  }
  0x49   : > { %2076 = vmatprep.subr.bf16.mxu0 %v2401_v3  ;;  %2084 = vmatprep.subr.bf16.mxu1 %v2401_v3  ;;  %v2649_v5 = vld [vmem:[%s2639_s19] sm:$0xff]  ;;  %v2652_v6 = vld [vmem:[%s2639_s19 + $0x8] sm:$0xff]  ;;  %vm831_vm3 = vcmask 130048   ;;  %s3004_s15 = sld [smem:[#allocation20_spill]]  ;;  %s2404_s1 = smov 64   ;;  %vm1251_vm4 = vcmask 1043456  }
  0x4a   : > { %2077 = vmatpush3.bf16.msra.mxu0 %v2255_v2  ;;  %2080 = vmatprep.mubr.msk.bf16.mxu0 %vm2402_vm1, %v2401_v3  ;;  %v746_v7 = vpack.c.bf16 %v2652_v6, %v2649_v5  ;;  %v1976_v8 = vld [vmem:[%s3003_s10] ss:$0 sm:$0xff]  ;;  %s2406_s27 = smov 112   ;;  %s2407_s0 = smov 48   ;;  %vm1305_vm5 = vcmask 1042432   ;;  %vm1262_vm6 = vcmask 1046528  }
  0x4b   : > { %2078 = vmatprep.subr.bf16.mxu0 %v2401_v3  ;;  %2086 = vmatprep.mubr.msk.bf16.mxu1 %vm2402_vm1, %v2401_v3  ;;  %v2257_v50 = vld [vmem:[%s2597_s20] sm:$0xff]   ;;  %s3006_s17 = scalar_lea.vmem %s2941_s6, %s2571_s29  ;;  %s3007_s21 = sld [smem:[#allocation18_spill]]  ;;  %vm1317_vm7 = vcmask 1041408   ;;  %vm1274_vm8 = vcmask 1045504   ;;  %vm1329_vm9 = vcmask 1040384   ;;  %vm1286_vm10 = vcmask 1044480  }
  0x4c   : > { %s3008_s2 = scalar_lea.vmem %s2942_s7, %s2571_s29  ;;  %s3009_s16 = sld [smem:[#allocation24_spill]]  ;;  %vm1343_vm11 = vcmask 523264   ;;  %vm1346_vm12 = vcmask 785408  }
  0x4d   : > { %s3016_s24 = sld [smem:[#allocation6_spill]]  ;;  %s1744_s3 = sshll.u32 %s2639_s19, 4  ;;  %s2876_s3 = int_to_ptr.vmem [resolvable:$true] %s1744_s3 }
  0x4e   : > { %2079 = vmatpush3.bf16.msra.mxu0 %v2256_v4 }
  0x4f   : > { %2090 = vmatprep.subr.bf16.mxu0 %v2401_v3  ;;  %s3005_s22 = scalar_lea.vmem %s3004_s15, %s2568_s18  ;;  %s2405_s18 = smov 80  }
  0x50   : > { %v2683_v19 = vld [vmem:[%s3005_s22] ss:$0 sm:$0xff]  ;;  %s2409_s15 = smov 32   ;;  %s3011_s22 = sld [smem:[#allocation25_spill]] }
  0x51   : > { %2081 = vmatmul.mubr.msk.bf16.vlgmr.msra.gmra.mrb[0].mxu0 %vm770_vm2, %v746_v7 }
  0x52   : > { %2092 = vmatprep.mubr.msk.bf16.mxu0 %vm2402_vm1, %v2401_v3  ;;  %s3010_s26 = scalar_lea.vmem %s3009_s16, %s2571_s29  ;;  %s3018_s16 = sld [smem:[#allocation28_spill]] }
 0x124   : > { %v808_v9 = vpop.f32.mrb[0].mxu0 }
 0x125   : > { %v2082_v10 = vpop.f32.mrb[1].mxu0  ;;  %v809_v12 = vadd.f32 %v1976_v8, %v808_v9 }
 0x126   : > { %v811_v11 = vpop.f32.mrb[2].mxu0 }
 0x127   : > { %v812_v13 = vadd.f32 %v1976_v8, %v811_v11  ;;  %v2083_v14 = vpop.f32.mrb[3].mxu0 }
 0x129   : > { %v2668_v15 = vpack.c.bf16 %v812_v13, %v809_v12 }
 0x12b   : > { %829 = vrot.lane.b32.xlu0 %v2668_v15, %s2403_s23 }
 0x19d   : > { %v830_v16 = vpop.permute.xlu0 %829 }
 0x19e   : > { %v836_v17 = vsel %vm831_vm3, %v830_v16, 0  ;;  %v2258_v16 = vld [vmem:[%s2597_s20 + $0x8] sm:$0xff]  }
 0x19f   : > { %2085 = vmatpush3.bf16.xpose.msra.mxu1 %v836_v17 }
 0x1a0   : > { %2096 = vmatprep.subr.bf16.mxu1 %v2401_v3 }
 0x1a6   : > { %2087 = vmatmul.mubr.msk.bf16.vlgmr.msra.gmra.mrb[0].mxu1 %vm831_vm3, %v2668_v15 }
 0x1a7   : > { %2098 = vmatprep.mubr.msk.bf16.mxu1 %vm2402_vm1, %v2401_v3  ;;  %2097 = vmatpush3.bf16.msra.mxu1 %v2257_v50 }
 0x1a8   : > { %2108 = vmatprep.subr.bf16.mxu1 %v2401_v3 }
 0x279   : > { %v872_v18 = vpop.f32.mrb[0].mxu1 }
 0x27a   : > { %v879_v20 = vmul.f32 0.25, %v872_v18  ;;  %v2088_v21 = vpop.f32.mrb[1].mxu1 }
 0x27b   : > { %v875_v22 = vpop.f32.mrb[2].mxu1 }
 0x27c   : > { %v880_v23 = vmul.f32 0.25, %v875_v22  ;;  %v2089_v24 = vpop.f32.mrb[3].mxu1  ;;  %v887_v25 = vadd.f32 %v2683_v19, %v879_v20 }
 0x27e   : > { %v889_v26 = vsel %vm831_vm3, %v887_v25, -inf  ;;  %v888_v27 = vadd.f32 %v2683_v19, %v880_v23 }
 0x27f   : > { %890 = vmax.xlane.f32.xlu0 %v889_v26 }
 0x280   : > { %v892_v28 = vsel %vm831_vm3, %v888_v27, -inf }
 0x281   : > { %893 = vmax.xlane.f32.xlu1 %v892_v28 }
 0x292   : > { %912 = vrot.lane.b32.xlu1 %v2668_v15, %s2404_s1 }
 0x30c   : > { %v891_v29 = vpop.xlane.xlu0 %890 }
 0x30d   : > { %v895_v30 = vsub.f32 %v887_v25, %v891_v29 }
 0x30e   : > { %v894_v31 = vpop.xlane.xlu1 %893 }
 0x30f   : > { %v897_v32 = vmul.f32 1.442695, %v895_v30  ;;  %v896_v33 = vsub.f32 %v888_v27, %v894_v31 }
 0x311   : > { %2281 = vpow2.f32 %v897_v32  ;;  %v899_v34 = vmul.f32 1.442695, %v896_v33  ;;  %v1980_v33 = vld [vmem:[%s3006_s17] ss:$0 sm:$0xff] }
 0x312   : > { %v913_v35 = vpop.permute.xlu1 %912 }
 0x313   : > { %2283 = vpow2.f32 %v899_v34  ;;  %2091 = vmatpush3.bf16.msra.mxu0 %v913_v35 }
 0x314   : > { %2102 = vmatprep.subr.bf16.mxu0 %v2401_v3 }
 0x31b   : > { %v2282_v36 = vpop.eup %2281 }
 0x31c   : > { %v901_v37 = vsel %vm831_vm3, %v2282_v36, 0.0 }
 0x31d   : > { %v2284_v38 = vpop.eup %2283  ;;  %902 = vadd.xlane.f32.xlu1 %v901_v37 }
 0x31e   : > { %v904_v39 = vsel %vm831_vm3, %v2284_v38, 0.0 }
 0x321   : > { %905 = vadd.xlane.f32.xlu1 %v904_v39 }
 0x332   : > { %1014 = vrot.lane.b32.xlu1 %v2668_v15, %s2405_s18 }
 0x336   : > { %1012 = vrot.lane.b32.xlu1 %v2668_v15, %s2406_s27 }
 0x3aa   : > { %v903_v40 = vpop.xlane.xlu1 %902 }
 0x3ab   : > { %2285 = vrcp.f32 %v903_v40 }
 0x3ae   : > { %v906_v41 = vpop.xlane.xlu1 %905 }
 0x3af   : > { %2287 = vrcp.f32 %v906_v41 }
 0x3b2   : > { %v1015_v46 = vpop.permute.xlu1 %1014 }
 0x3b3   : > { %v1020_v48 = vsel %vm831_vm3, %v1015_v46, 0  ;;  %v2408_v46 = vmov 0  }
 0x3b4   : > { %2223 = vset.pattern.permute.xlu1 %v2408_v46  ;;  %2224 = vset.pattern.permute.xlu0 %v2408_v46 }
 0x3b5   : > { %v2286_v42 = vpop.eup %2285 }
 0x3b6   : > { %v909_v44 = vmul.f32 %v2286_v42, %v2282_v36  ;;  %v1013_v49 = vpop.permute.xlu1 %1012 }
 0x3b9   : > { %v2288_v43 = vpop.eup %2287 }
 0x3ba   : > { %v910_v45 = vmul.f32 %v2288_v43, %v2284_v38 }
 0x3bc   : > { %v911_v47 = vpack.c.bf16 %v910_v45, %v909_v44 }
 0x3be   : > { %2093 = vmatmul.mubr.msk.bf16.vlgmr.msra.gmra.mrb[4].mxu0 %vm831_vm3, %v911_v47  ;;  %v745_v47 = vld [vmem:[%s3007_s21 + $0x8] sm:$0xff] }
 0x3bf   : > { %2103 = vmatpush3.bf16.xpose.msra.mxu0 %v1020_v48  ;;  %2104 = vmatprep.mubr.msk.bf16.mxu0 %vm2402_vm1, %v2401_v3 }
 0x3c0   : > { %2114 = vmatprep.subr.bf16.mxu0 %v2401_v3 }
 0x3c6   : > { %2105 = vmatmul.mubr.msk.bf16.vlgmr.msra.gmra.mrb[8].mxu0 %vm831_vm3, %v1013_v49 }
 0x3c7   : > { %2116 = vmatprep.mubr.msk.bf16.mxu0 %vm2402_vm1, %v2401_v3  ;;  %2115 = vmatpush3.bf16.msra.mxu0 %v2258_v16 }
 0x3c8   : > { %2120 = vmatprep.subr.bf16.mxu0 %v2401_v3 }
 0x491   : > { %v952_v51 = vpop.f32.mrb[4].mxu0 }
 0x492   : > { %v2094_v52 = vpop.f32.mrb[5].mxu0 }
 0x493   : > { %v955_v53 = vpop.f32.mrb[6].mxu0 }
 0x494   : > { %v959_v54 = vpack.c.bf16 %v955_v53, %v952_v51  ;;  %v2095_v55 = vpop.f32.mrb[7].mxu0 }
 0x496   : > { %2099 = vmatmul.mubr.msk.bf16.vlgmr.msra.gmra.mrb[4].mxu1 %vm831_vm3, %v959_v54 }
 0x497   : > { %2110 = vmatprep.mubr.msk.bf16.mxu1 %vm2402_vm1, %v2401_v3 }
 0x499   : > { %v1056_v56 = vpop.f32.mrb[8].mxu0 }
 0x49a   : > { %v1063_v57 = vmul.f32 0.25, %v1056_v56  ;;  %v2106_v58 = vpop.f32.mrb[9].mxu0  ;;  %v744_v56 = vld [vmem:[%s3007_s21] sm:$0xff] }
 0x49b   : > { %v1059_v59 = vpop.f32.mrb[10].mxu0  ;;  %v2260_v58 = vld [vmem:[%s2620_s5 + $0x88] sm:$0xff]  }
 0x49c   : > { %v1064_v60 = vmul.f32 0.25, %v1059_v59  ;;  %v2107_v61 = vpop.f32.mrb[11].mxu0  ;;  %v1065_v62 = vadd.f32 %v2683_v19, %v1063_v57  ;;  %v2259_v57 = vld [vmem:[%s2620_s5 + $0x80] sm:$0xff]  }
 0x49d   : > { %v2261_v59 = vld [vmem:[%s2620_s5 + $0x40] sm:$0xff]   ;;  %v2263_v61 = vld [vmem:[%s2620_s5 + $0x48] sm:$0xff]  }
 0x49e   : > { %v1067_v63 = vsel %vm831_vm3, %v1065_v62, -inf  ;;  %v1066_v0 = vadd.f32 %v2683_v19, %v1064_v60  ;;  %v2262_v60 = vld [vmem:[%s2620_s5] sm:$0xff]  }
 0x49f   : > { %1068 = vmax.xlane.f32.xlu0 %v1067_v63 }
 0x4a0   : > { %v1070_v1 = vsel %vm831_vm3, %v1066_v0, -inf }
 0x4a1   : > { %1071 = vmax.xlane.f32.xlu1 %v1070_v1 }
 0x52c   : > { %v1069_v2 = vpop.xlane.xlu0 %1068 }
 0x52d   : > { %v1073_v4 = vsub.f32 %v1065_v62, %v1069_v2  ;;  %v2264_v62 = vld [vmem:[%s2620_s5 + $0x8] sm:$0xff]  }
 0x52e   : > { %v1072_v7 = vpop.xlane.xlu1 %1071 }
 0x52f   : > { %v1075_v8 = vmul.f32 1.442695, %v1073_v4  ;;  %v1074_v9 = vsub.f32 %v1066_v0, %v1072_v7 }
 0x531   : > { %2289 = vpow2.f32 %v1075_v8  ;;  %v1077_v10 = vmul.f32 1.442695, %v1074_v9  ;;  %v1990_v9 = vld [vmem:[%s3008_s2] ss:$0 sm:$0xff] }
 0x533   : > { %2291 = vpow2.f32 %v1077_v10 }
 0x53b   : > { %v2290_v11 = vpop.eup %2289 }
 0x53c   : > { %v1079_v12 = vsel %vm831_vm3, %v2290_v11, 0.0 }
 0x53d   : > { %v2292_v13 = vpop.eup %2291  ;;  %1080 = vadd.xlane.f32.xlu0 %v1079_v12 }
 0x53e   : > { %v1082_v14 = vsel %vm831_vm3, %v2292_v13, 0.0 }
 0x541   : > { %1083 = vadd.xlane.f32.xlu0 %v1082_v14 }
 0x557   : > { %1090 = vrot.lane.b32.xlu0 %v2668_v15, %s2407_s0 }
 0x569   : > { %v1003_v17 = vpop.f32.mrb[4].mxu1 }
 0x56a   : > { %v2100_v18 = vpop.f32.mrb[5].mxu1  ;;  %v1010_v34 = vadd.f32 %v1980_v33, %v1003_v17 }
 0x56b   : > { %v1006_v19 = vpop.f32.mrb[6].mxu1 }
 0x56c   : > { %v2101_v20 = vpop.f32.mrb[7].mxu1  ;;  %v1011_v36 = vadd.f32 %v1980_v33, %v1006_v19 }
 0x5ca   : > { %v1081_v21 = vpop.xlane.xlu0 %1080 }
 0x5cb   : > { %2293 = vrcp.f32 %v1081_v21 }
 0x5ce   : > { %v1084_v22 = vpop.xlane.xlu0 %1083 }
 0x5cf   : > { %2295 = vrcp.f32 %v1084_v22 }
 0x5d2   : > { %v1091_v23 = vpop.permute.xlu0 %1090 }
 0x5d3   : > { %2109 = vmatpush3.bf16.msra.mxu1 %v1091_v23  ;;  %v2265_v23 = vld [vmem:[%s2620_s5 + $0x50] sm:$0xff]  }
 0x5d4   : > { %2046 = vmatprep.subr.bf16.mxu1 %v2261_v59 }
 0x5d5   : > { %v2294_v24 = vpop.eup %2293 }
 0x5d6   : > { %v1087_v26 = vmul.f32 %v2294_v24, %v2290_v11  ;;  %v1991_v11 = vld [vmem:[%s3010_s26] ss:$0 sm:$0xff]  ;;  %v2266_v24 = vld [vmem:[%s2620_s5 + $0x10] sm:$0xff]  }
 0x5d9   : > { %v2296_v25 = vpop.eup %2295 }
 0x5da   : > { %v1088_v27 = vmul.f32 %v2296_v25, %v2292_v13 }
 0x5dc   : > { %v1089_v15 = vpack.c.bf16 %v1088_v27, %v1087_v26 }
 0x5de   : > { %2111 = vmatmul.mubr.msk.bf16.vlgmr.msra.gmra.mrb[8].mxu1 %vm831_vm3, %v1089_v15  ;;  %v2267_v15 = vld [vmem:[%s2620_s5 + $0x58] sm:$0xff]  }
 0x5df   : > { %2047 = vmatpush3.bf16.msra.mxu1 %v2262_v60 }
 0x5e0   : > { %2048 = vmatprep.subr.bf16.mxu1 %v2263_v61 }
 0x5e3   : > { %2049 = vmatpush3.bf16.msra.mxu1 %v2264_v62 }
 0x5e4   : > { %2050 = vmatprep.subr.bf16.mxu1 %v2265_v23 }
 0x5e7   : > { %2051 = vmatpush3.bf16.msra.mxu1 %v2266_v24 }
 0x5e8   : > { %2052 = vmatprep.subr.bf16.mxu1 %v2267_v15 }
 0x6b1   : > { %v1130_v28 = vpop.f32.mrb[8].mxu1 }
 0x6b2   : > { %v2112_v29 = vpop.f32.mrb[9].mxu1 }
 0x6b3   : > { %v1133_v30 = vpop.f32.mrb[10].mxu1 }
 0x6b4   : > { %v1137_v31 = vpack.c.bf16 %v1133_v30, %v1130_v28  ;;  %v2113_v32 = vpop.f32.mrb[11].mxu1  ;;  %v2268_v28 = vld [vmem:[%s2620_s5 + $0x18] sm:$0xff]  }
 0x6b5   : > { %2053 = vmatpush3.bf16.msra.mxu1 %v2268_v28 }
 0x6b6   : > { %2117 = vmatmul.mubr.msk.bf16.vlgmr.msra.gmra.mrb[12].mxu0 %vm831_vm3, %v1137_v31 }
 0x6b7   : > { %2124 = vmatprep.mubr.msk.bf16.mxu0 %vm2402_vm1, %v2401_v3  ;;  %2121 = vmatpush3.bf16.msra.mxu0 %v2259_v57  ;;  %v2274_v57 = vld [vmem:[%s2620_s5 + $0x30] sm:$0xff]  }
 0x6b8   : > { %2122 = vmatprep.subr.bf16.mxu0 %v2401_v3 }
 0x6bb   : > { %2123 = vmatpush3.bf16.msra.mxu0 %v2260_v58 }
 0x6bc   : > { %2128 = vmatprep.subr.bf16.mxu0 %v2401_v3 }
 0x789   : > { %v1181_v35 = vpop.f32.mrb[12].mxu0 }
 0x78a   : > { %v1188_v37 = vadd.f32 %v1181_v35, %v1010_v34  ;;  %v2118_v38 = vpop.f32.mrb[13].mxu0 }
 0x78b   : > { %v1184_v39 = vpop.f32.mrb[14].mxu0 }
 0x78c   : > { %v1189_v40 = vadd.f32 %v1184_v39, %v1011_v36  ;;  %v2119_v41 = vpop.f32.mrb[15].mxu0  ;;  %v1190_v42 = vadd.f32 %v1188_v37, %v2649_v5 }
 0x78d   : > { %v2270_v41 = vld [vmem:[%s2620_s5 + $0x20] sm:$0xff]  }
 0x78e   : > { %v1194_v43 = vsel %vm770_vm2, %v1190_v42, 0.0  ;;  %v1191_v44 = vadd.f32 %v1189_v40, %v2652_v6  ;;  %v2269_v40 = vld [vmem:[%s2620_s5 + $0x60] sm:$0xff]  }
 0x78f   : > { %1195 = vadd.xlane.f32.xlu0 %v1194_v43  ;;  %2054 = vmatprep.subr.bf16.mxu1 %v2269_v40 }
 0x790   : > { %v1197_v45 = vsel %vm770_vm2, %v1191_v44, 0.0  ;;  %2055 = vmatpush3.bf16.msra.mxu1 %v2270_v41 }
 0x791   : > { %1198 = vadd.xlane.f32.xlu1 %v1197_v45 }
 0x7a5   : > { %1244 = vperm.xlu0 %2224, %v745_v47  }
 0x81c   : > { %v1196_v48 = vpop.xlane.xlu0 %1195 }
 0x81d   : > { %v1201_v49 = vmul.f32 0.03125, %v1196_v48 }
 0x81e   : > { %v1199_v50 = vpop.xlane.xlu1 %1198 }
 0x81f   : > { %v1203_v5 = vsub.f32 %v1190_v42, %v1201_v49  ;;  %v1202_v51 = vmul.f32 0.03125, %v1199_v50  ;;  %v2271_v50 = vld [vmem:[%s2620_s5 + $0x68] sm:$0xff]  }
 0x820   : > { %2056 = vmatprep.subr.bf16.mxu1 %v2271_v50 }
 0x821   : > { %v1204_v52 = vsub.f32 %v1191_v44, %v1202_v51  ;;  %v1205_v6 = vmul.f32 %v1203_v5, %v1203_v5 }
 0x823   : > { %v1207_v53 = vsel %vm770_vm2, %v1205_v6, 0.0  ;;  %v1206_v54 = vmul.f32 %v1204_v52, %v1204_v52 }
 0x824   : > { %1208 = vadd.xlane.f32.xlu1 %v1207_v53  ;;  %v2758_v20 = vpop.permute.xlu0 %1244 }
 0x825   : > { %v1210_v55 = vsel %vm770_vm2, %v1206_v54, 0.0 }
 0x828   : > { %1211 = vadd.xlane.f32.xlu1 %v1210_v55 }
 0x839   : > { %1239 = vperm.xlu1 %2223, %v744_v56   ;;  %v2273_v56 = vld [vmem:[%s2620_s5 + $0x70] sm:$0xff]  }
 0x8b1   : > { %v1209_v63 = vpop.xlane.xlu1 %1208 }
 0x8b2   : > { %v1213_v0 = vmul.f32 0.03125, %v1209_v63 }
 0x8b4   : > { %v1215_v1 = vadd.f32 1e-05, %v1213_v0 }
 0x8b5   : > { %v1212_v2 = vpop.xlane.xlu1 %1211 }
 0x8b6   : > { %2297 = vrsqrt.f32 %v1215_v1  ;;  %v1214_v4 = vmul.f32 0.03125, %v1212_v2  ;;  %v2275_v2 = vld [vmem:[%s2620_s5 + $0x78] sm:$0xff]  }
 0x8b8   : > { %v1216_v7 = vadd.f32 1e-05, %v1214_v4  ;;  %v2276_v4 = vld [vmem:[%s2620_s5 + $0x38] sm:$0xff]  }
 0x8b9   : > { %v2753_v14 = vpop.permute.xlu1 %1239 }
 0x8ba   : > { %2299 = vrsqrt.f32 %v1216_v7 }
 0x8c0   : > { %v2298_v8 = vpop.eup %2297 }
 0x8c1   : > { %v1219_v10 = vmul.f32 %v2298_v8, %v1203_v5  ;;  %v2272_v5 = vld [vmem:[%s2620_s5 + $0x28] sm:$0xff]   ;;  %s2410_s5 = smov [#allocation2]  }
 0x8c2   : > { %2057 = vmatpush3.bf16.msra.mxu1 %v2272_v5 }
 0x8c3   : > { %v1227_v12 = vmul.f32 %v1990_v9, %v1219_v10  ;;  %2058 = vmatprep.subr.bf16.mxu1 %v2273_v56 }
 0x8c4   : > { %v2300_v13 = vpop.eup %2299 }
 0x8c5   : > { %v1235_v16 = vadd.f32 %v1991_v11, %v1227_v12  ;;  %v1220_v17 = vmul.f32 %v2300_v13, %v1204_v52 }
 0x8c6   : > { %2059 = vmatpush3.bf16.msra.mxu1 %v2274_v57  ;;  %v2278_v57 = vld [vmem:[%s2625_s25 + $0x8] sm:$0xff]  }
 0x8c7   : > { %v2756_v18 = vmul.f32 %v2753_v14, %v1235_v16  ;;  %v1228_v19 = vmul.f32 %v1990_v9, %v1220_v17  ;;  %2060 = vmatprep.subr.bf16.mxu1 %v2275_v2 }
 0x8c9   : > { %v1252_v21 = vrot.slane %v2756_v18, 4  ;;  %v1236_v22 = vadd.f32 %v1991_v11, %v1228_v19  ;;  %v2277_v19 = vld [vmem:[%s2625_s25] sm:$0xff]  }
 0x8ca   : > { %2061 = vmatpush3.bf16.msra.mxu1 %v2276_v4 }
 0x8cb   : > { %v2764_v25 = vmul.f32 %v2758_v20, %v1236_v22  ;;  %v2767_v26 = vsel %vm1251_vm4, 0.0, %v1252_v21 }
 0x8cc   : > { %v1306_v31 = vrot.slane %v2767_v26, 5  ;;  %v1263_v39 = vrot.slane %v2767_v26, 1  ;;  %v1318_v47 = vrot.slane %v2767_v26, 6  ;;  %v1275_v58 = vrot.slane %v2767_v26, 2 }
 0x8cd   : > { %v1253_v27 = vrot.slane %v2764_v25, 4  ;;  %v1330_v0 = vrot.slane %v2767_v26, 7  ;;  %v1287_v11 = vrot.slane %v2767_v26, 3  ;;  %v1298_v28 = vrot.slane %v2767_v26, 4 }
 0x8cf   : > { %v2773_v29 = vsel %vm1251_vm4, %v1252_v21, %v1253_v27  ;;  %v2776_v30 = vsel %vm1251_vm4, %v1253_v27, 0.0 }
 0x8d0   : > { %v1357_v32 = vpack.c.bf16 %v2776_v30, %v2773_v29  ;;  %v1307_v33 = vrot.slane %v2773_v29, 5  ;;  %v1309_v34 = vrot.slane %v2776_v30, 5  ;;  %v1264_v35 = vrot.slane %v2773_v29, 1 }
 0x8d1   : > { %v1266_v36 = vrot.slane %v2776_v30, 1  ;;  %v1319_v45 = vrot.slane %v2773_v29, 6  ;;  %v1321_v46 = vrot.slane %v2776_v30, 6  ;;  %v1301_v48 = vrot.slane %v2776_v30, 4 }
 0x8d2   : > { %2125 = vmatmul.mubr.msk.bf16.vlgmr.msra.gmra.mrb[16].mxu0 %vm770_vm2, %v1357_v32  ;;  %v1308_v37 = vsel %vm1305_vm5, %v1306_v31, %v1307_v33  ;;  %v1310_v38 = vsel %vm1305_vm5, %v1307_v33, %v1309_v34  ;;  %v1265_v43 = vsel %vm1262_vm6, %v1263_v39, %v1264_v35  ;;  %v1299_v49 = vrot.slane %v2773_v29, 4 }
 0x8d3   : > { %v2225_v42 = vpack.i.bf16 %v1310_v38, %v1308_v37  ;;  %2136 = vmatprep.mubr.msk.bf16.mxu0 %vm2402_vm1, %v2401_v3  ;;  %v1267_v44 = vsel %vm1262_vm6, %v1264_v35, %v1266_v36  ;;  %v1276_v52 = vrot.slane %v2773_v29, 2  ;;  %v1320_v6 = vsel %vm1317_vm7, %v1318_v47, %v1319_v45  ;;  %2129 = vmatpush3.bf16.msra.mxu0 %v2277_v19 }
 0x8d4   : > { %v2230_v51 = vpack.i.bf16 %v1267_v44, %v1265_v43  ;;  %v1322_v53 = vsel %vm1317_vm7, %v1319_v45, %v1321_v46  ;;  %v1278_v54 = vrot.slane %v2776_v30, 2  ;;  %v1302_v55 = vsel %vm1251_vm4, %v1299_v49, %v1301_v48  ;;  %2130 = vmatprep.subr.bf16.mxu0 %v2401_v3 }
 0x8d5   : > { %2226 = vrot.lane.b32.xlu1 %v2225_v42, %s2409_s15  ;;  %v2235_v59 = vpack.i.bf16 %v1322_v53, %v1320_v6  ;;  %v1277_v60 = vsel %vm1274_vm8, %v1275_v58, %v1276_v52  ;;  %v1331_v62 = vrot.slane %v2773_v29, 7  ;;  %v1333_v63 = vrot.slane %v2776_v30, 7  ;;  %v2279_v58 = vld [vmem:[%s2625_s25 + $0x10] sm:$0xff]  }
 0x8d6   : > { %v1279_v61 = vsel %vm1274_vm8, %v1276_v52, %v1278_v54  ;;  %v1288_v9 = vrot.slane %v2773_v29, 3  ;;  %v1290_v10 = vrot.slane %v2776_v30, 3  ;;  %v1300_v32 = vsel %vm1251_vm4, %v1298_v28, %v1299_v49 }
 0x8d7   : > { %v2240_v1 = vpack.i.bf16 %v1279_v61, %v1277_v60  ;;  %v1332_v7 = vsel %vm1329_vm9, %v1330_v0, %v1331_v62  ;;  %v1334_v8 = vsel %vm1329_vm9, %v1331_v62, %v1333_v63  ;;  %2131 = vmatpush3.bf16.msra.mxu0 %v2278_v57 }
 0x8d8   : > { %v2245_v12 = vpack.i.bf16 %v1334_v8, %v1332_v7  ;;  %v1289_v13 = vsel %vm1286_vm10, %v1287_v11, %v1288_v9  ;;  %v1291_v16 = vsel %vm1286_vm10, %v1288_v9, %v1290_v10  ;;  %2132 = vmatprep.subr.bf16.mxu0 %v2401_v3 }
 0x8d9   : > { %2231 = vrot.lane.b32.xlu1 %v2230_v51, %s2409_s15  ;;  %v2250_v17 = vpack.i.bf16 %v1291_v16, %v1289_v13  ;;  %s2305_s15 = scalar_lea.vmem %s2876_s3, 256 }
 0x8da   : > { %p2306_p1 = scmp.ne.s32.totalorder %s2876_s3, %s2305_s15 }
 0x8db   : > { %2133 = vmatpush3.bf16.msra.mxu0 %v2279_v58 }
 0x8dc   : > { %2134 = vmatprep.subr.bf16.mxu0 %v2401_v3  ;;  %p2307_p2 = pnand %p2306_p1, %p2542_p3 }
 0x8dd   : > { %2236 = vrot.lane.b32.xlu1 %v2235_v59, %s2404_s1  ;;  %v2280_v59 = vld [vmem:[%s2625_s25 + $0x18] sm:$0xff]  }
 0x8de   : > { %p2308_p4 = pneg %p2307_p2 }
 0x8df   : > { %2135 = vmatpush3.bf16.msra.mxu0 %v2280_v59 }
 0x8e1   : > { %2241 = vrot.lane.b32.xlu1 %v2240_v1, %s2404_s1  ;;  %s3012_s1 = scalar_lea.vmem %s3011_s22, %s2571_s29 }
 0x8e2   : > { %v1992_v61 = vld [vmem:[%s3012_s1] ss:$0 sm:$0xff] }
 0x8e5   : > { %2246 = vrot.lane.b32.xlu1 %v2245_v12, %s2403_s23  ;;  %v2012_v12 = vld [vmem:[%s724_s30] ss:$0 sm:$0xff]  ;;  %s3013_s30 = sld [smem:[#allocation9_spill]] }
 0x8e9   : > { %2251 = vrot.lane.b32.xlu1 %v2250_v17, %s2403_s23  ;;  %s2309_s23 = sshll.u32 %s2410_s5, 4  ;;  %s2310_s23 = int_to_ptr.vmem [resolvable:$false] %s2309_s23 }
 0x8ea   : > { %s2311_s22 = scalar_lea.vmem %s2310_s23, 512  ;;  %p2312_p5 = scmp.lt.s32.totalorder %s2876_s3, %s2310_s23 }
 0x8eb   : > { %s2030_s2 = sshll.u32 %s3013_s30, 8  ;;  %p2313_p6 = scmp.lt.s32.totalorder %s2311_s22, %s2305_s15 }
 0x8ec   : > { %s2874_s26 = scalar_lea.hbm %s3018_s16, %s2030_s2 }
 0x8ed   : > { %p2314_p7 = por %p2313_p6, %p2312_p5 }
 0x8ef   : > { %p2315_p8 = pnand %p2314_p7, %p2308_p4 }
 0x947   : > { %v2227_v21 = vpop.permute.xlu1 %2226 }
 0x948   : > { %v2229_v24 = vunpack.i.h.bf16 %v2227_v21  ;;  %v2228_v27 = vunpack.i.l.bf16 %v2227_v21 }
 0x94a   : > { %v1349_v33 = vsel %vm770_vm2, %v1300_v32, %v2228_v27  ;;  %v1350_v34 = vsel %vm770_vm2, %v1302_v55, %v2229_v24 }
 0x94b   : > { %v2232_v22 = vpop.permute.xlu1 %2231 }
 0x94c   : > { %v2234_v36 = vunpack.i.h.bf16 %v2232_v22  ;;  %v2233_v37 = vunpack.i.l.bf16 %v2232_v22 }
 0x94e   : > { %v1342_v48 = vsel %vm770_vm2, %v2773_v29, %v2234_v36  ;;  %v1341_v49 = vsel %vm770_vm2, %v2767_v26, %v2233_v37 }
 0x94f   : > { %v2237_v23 = vpop.permute.xlu1 %2236 }
 0x950   : > { %v2239_v30 = vunpack.i.h.bf16 %v2237_v23  ;;  %v2238_v31 = vunpack.i.l.bf16 %v2237_v23 }
 0x952   : > { %v1352_v40 = vsel %vm1343_vm11, %v1350_v34, %v2239_v30  ;;  %v1351_v41 = vsel %vm1343_vm11, %v1349_v33, %v2238_v31 }
 0x953   : > { %v2242_v15 = vpop.permute.xlu1 %2241 }
 0x954   : > { %v2244_v42 = vunpack.i.h.bf16 %v2242_v15  ;;  %v2243_v43 = vunpack.i.l.bf16 %v2242_v15 }
 0x956   : > { %v1344_v51 = vsel %vm1343_vm11, %v1341_v49, %v2243_v43  ;;  %v1345_v52 = vsel %vm1343_vm11, %v1342_v48, %v2244_v42 }
 0x957   : > { %v2247_v35 = vpop.permute.xlu1 %2246 }
 0x958   : > { %v2249_v38 = vunpack.i.h.bf16 %v2247_v35  ;;  %v2248_v39 = vunpack.i.l.bf16 %v2247_v35 }
 0x95a   : > { %v1353_v44 = vsel %vm1346_vm12, %v1351_v41, %v2248_v39  ;;  %v1354_v45 = vsel %vm1346_vm12, %v1352_v40, %v2249_v38 }
 0x95b   : > { %v2252_v46 = vpop.permute.xlu1 %2251  ;;  %v1356_v47 = vpack.c.bf16 %v1354_v45, %v1353_v44  ;;  %v2018_v44 = vld [vmem:[%s727_s13] ss:$0 sm:$0xff] }
 0x95c   : > { %v2254_v50 = vunpack.i.h.bf16 %v2252_v46  ;;  %v2253_v5 = vunpack.i.l.bf16 %v2252_v46  ;;  %v2019_v46 = vld [vmem:[%s730_s8] ss:$0 sm:$0xff]  ;;  %s3019_s8 = sand.u32 1, %s3016_s24  }
 0x95d   : > { %1544 = vmatprep.mubr.bf16.mxu1 %v1356_v47  ;;  %s2883_s29 = scalar_lea.sflag [#allocation3], %s3019_s8 }
 0x95e   : > { %v1347_v6 = vsel %vm1346_vm12, %v1344_v51, %v2253_v5  ;;  %v1348_v53 = vsel %vm1346_vm12, %v1345_v52, %v2254_v50 }
 0x95f   : > { %v1355_v54 = vpack.c.bf16 %v1348_v53, %v1347_v6 }
 0x961   : > { %1545 = vmatmul.mubr.bf16.vlgmr.msra.gmra.mrb[12].mxu1 %v1355_v54 }
 0x9a5   : > { %v1587_v29 = vpop.f32.mrb[16].mxu0 }
 0x9a6   : > { %v2126_v55 = vpop.f32.mrb[17].mxu0 }
 0x9a7   : > { %v1590_v56 = vpop.f32.mrb[18].mxu0 }
 0x9a8   : > { %v2127_v26 = vpop.f32.mrb[19].mxu0 }
 0xa34   : > { %v2062_v60 = vpop.f32.mrb[12].mxu1 }
 0xa35   : > { %v2063_v62 = vpop.f32.mrb[13].mxu1 }
 0xa36   : > { %v2064_v63 = vadd.f32 %v2063_v62, %v2062_v60  ;;  %v2065_v0 = vpop.f32.mrb[14].mxu1 }
 0xa37   : > { %v2066_v1 = vpop.f32.mrb[15].mxu1 }
 0xa38   : > { %v1547_v2 = vadd.f32 %v2064_v63, %v1992_v61  ;;  %v2067_v4 = vadd.f32 %v2066_v1, %v2065_v0 }
 0xa3a   : > { %v1588_v7 = vadd.f32 %v1587_v29, %v1547_v2  ;;  %v1550_v8 = vadd.f32 %v2067_v4, %v1992_v61 }
 0xa3c   : > { %v1591_v9 = vadd.f32 %v1590_v56, %v1550_v8  ;;  %v1594_v10 = vmax.f32 %v1588_v7, 0.0 }
 0xa3e   : > { %v1595_v11 = vmax.f32 %v1591_v9, 0.0 }
 0xa40   : > { %v1596_v3 = vpack.c.bf16 %v1595_v11, %v1594_v10 }
 0xa42   : > { %2137 = vmatmul.mubr.msk.bf16.vlgmr.msra.gmra.mrb[20].mxu0 %vm1343_vm11, %v1596_v3 }
 0xb15   : > { %v1673_v13 = vpop.f32.mrb[20].mxu0 }
 0xb16   : > { %v1674_v16 = vadd.f32 %v2012_v12, %v1673_v13  ;;  %v2138_v17 = vpop.f32.mrb[21].mxu0 }
 0xb17   : > { %v1676_v19 = vpop.f32.mrb[22].mxu0 }
 0xb18   : > { %v1677_v21 = vadd.f32 %v2012_v12, %v1676_v19  ;;  %v2139_v22 = vpop.f32.mrb[23].mxu0  ;;  %v1680_v23 = vadd.f32 %v1674_v16, %v2756_v18 }
 0xb1a   : > { %v1684_v24 = vsel %vm770_vm2, %v1680_v23, 0.0  ;;  %v1681_v27 = vadd.f32 %v1677_v21, %v2764_v25 }
 0xb1b   : > { %1685 = vadd.xlane.f32.xlu1 %v1684_v24 }
 0xb1c   : > { %v1687_v15 = vsel %vm770_vm2, %v1681_v27, 0.0 }
 0xb1d   : > { %1688 = vadd.xlane.f32.xlu0 %v1687_v15 }
 0xba8   : > { %v1686_v28 = vpop.xlane.xlu1 %1685 }
 0xba9   : > { %v1690_v30 = vmul.f32 0.03125, %v1686_v28 }
 0xbaa   : > { %v1689_v31 = vpop.xlane.xlu0 %1688 }
 0xbab   : > { %v1692_v32 = vsub.f32 %v1680_v23, %v1690_v30  ;;  %v1691_v33 = vmul.f32 0.03125, %v1689_v31 }
 0xbad   : > { %v1693_v34 = vsub.f32 %v1681_v27, %v1691_v33  ;;  %v1694_v35 = vmul.f32 %v1692_v32, %v1692_v32 }
 0xbaf   : > { %v1696_v36 = vsel %vm770_vm2, %v1694_v35, 0.0  ;;  %v1695_v18 = vmul.f32 %v1693_v34, %v1693_v34 }
 0xbb0   : > { %1697 = vadd.xlane.f32.xlu1 %v1696_v36 }
 0xbb1   : > { %v1699_v37 = vsel %vm770_vm2, %v1695_v18, 0.0 }
 0xbb4   : > { %1700 = vadd.xlane.f32.xlu1 %v1699_v37 }
 0xc3d   : > { %v1698_v25 = vpop.xlane.xlu1 %1697 }
 0xc3e   : > { %v1702_v38 = vmul.f32 0.03125, %v1698_v25 }
 0xc40   : > { %v1704_v39 = vadd.f32 1e-05, %v1702_v38 }
 0xc41   : > { %v1701_v40 = vpop.xlane.xlu1 %1700 }
 0xc42   : > { %2301 = vrsqrt.f32 %v1704_v39  ;;  %v1703_v41 = vmul.f32 0.03125, %v1701_v40 }
 0xc44   : > { %v1705_v42 = vadd.f32 1e-05, %v1703_v41 }
 0xc46   : > { %2303 = vrsqrt.f32 %v1705_v42 }
 0xc4c   : > { %v2302_v43 = vpop.eup %2301 }
 0xc4d   : > { %v1708_v45 = vmul.f32 %v2302_v43, %v1692_v32 }
 0xc4f   : > { %v1716_v47 = vmul.f32 %v2018_v44, %v1708_v45 }
 0xc50   : > { %v2304_v48 = vpop.eup %2303 }
 0xc51   : > { %v1724_v49 = vadd.f32 %v2019_v46, %v1716_v47  ;;  %v1709_v50 = vmul.f32 %v2304_v48, %v1693_v34 }
 0xc53   : > { %v1717_v5 = vmul.f32 %v2018_v44, %v1709_v50  ;;  %v1726_v51 = vmul.f32 %v1724_v49, %v2753_v14 }
 0xc55   : > { %v1725_v52 = vadd.f32 %v2019_v46, %v1717_v5  ;;  %1728 = vst.msk [vmem:[%s2639_s19] sm:$0xff] %vm770_vm2, %v1726_v51 }
 0xc57   : > { %v1727_v6 = vmul.f32 %v1725_v52, %v2758_v20 }
 0xc59   : > { %1729 = vst.msk [vmem:[%s2639_s19 + $0x8] sm:$0xff] %vm770_vm2, %v1727_v6 }
 0xc5a   : > { %2318 = shalt.err (!%p2315_p8)
}
 0xc5b   : > { %s2319_s19 = scalar_lea.hbm %s2874_s26, 256  ;;  %s2323_s18 = scalar_lea.hbm %s3018_s16, 512 }
 0xc5c   : > { %p2320_p10 = scmp.ne.s32.totalorder %s2874_s26, %s2319_s19  ;;  %p2324_p13 = scmp.lt.u32.totalorder %s2874_s26, %s3018_s16 }
 0xc5d   : > { %p2325_p0 = scmp.lt.u32.totalorder %s2323_s18, %s2319_s19  ;;  %p2327_p2 = scmp.lt.u32.totalorder %s2319_s19, %s2874_s26 }
 0xc5e   : > { %p2321_p11 = pnand %p2320_p10, %p2542_p3 }
 0xc5f   : > { %p2326_p1 = por %p2325_p0, %p2324_p13 }
 0xc60   : > { %p2322_p12 = pneg %p2321_p11 }
 0xc61   : > { %p2328_p4 = por %p2327_p2, %p2326_p1 }
 0xc63   : > { %p2329_p5 = pnand %p2328_p4, %p2322_p12 }
 0xc65   : > { %2332 = shalt.err (!%p2329_p5)
}
 0xc66   : > { %s2411_s0 = smov 128   ;;  %s2412_s20 = smov 8  }
 0xc67   : > { %2141 = dma.vmem_to_hbm [thread:$0]  (%p2542_p3), %s2876_s3, 256, %s2874_s26, %s2883_s29, %s2411_s0, %s2411_s0, %s2412_s20  }
 0xc68 PF: > { %s3020_s28 = sld [smem:[#allocation12_spill]]  ;;  %s3021_s17 = sld [smem:[#allocation5_spill]] }
 0xc6e   : > { %p2147_p6 = scmp.ge.s32.totalorder %s3020_s28, 2  ;;  %s1759_s24 = sand.u32 1, %s3021_s17  }
 0xc6f   : > { %s1760_s2 = scalar_lea.sflag [#allocation3], %s1759_s24 }
 0xc70   : > { %p2144_p7 = pnand %p2147_p6, %p2552_p9 }
 0xc72   : > { %2366 = dma.done.wait (!%p2144_p7), %s1760_s2, 256  }
 0xc73   : > { %2368 = vsyncadd (!%p2144_p7), %s1760_s2, 4294967040  ;;  %s28_s25 = sadd.s32 1, %s3020_s28   ;;  %s3023_s18 = sld [smem:[#allocation6_spill]] }
 0xc74   : > { %p25_p8 = scmp.ge.s32.totalorder %s28_s25, 6   ;;  %s3024_s19 = sld [smem:[#allocation7_spill]] }
 0xc75   : > { %s3025_s20 = sld [smem:[#allocation17_spill]]  ;;  %s3026_s21 = sld [smem:[#allocation10_spill]] }
 0xc76   : > { %s3027_s22 = sld [smem:[#allocation11_spill]]  ;;  %s3028_s23 = sld [smem:[#allocation13_spill]] }
 0xc77   : > { %s3029_s24 = sld [smem:[#allocation15_spill]]  ;;  %27 = sbr.rel (!%p25_p8) target bundleno = 16 (0x10), region = 161 }
 0xc7e   :  { %1765 = vsyncpa [#allocation3], 1 }
 0xc7f   :  { %1767 = vsyncpa [#allocation3 + $0x1], 1 }

</bundles_post_ra>
